<compile_context>
chip_gen: v7x
topology: tpu7x:2x2x1
jax: 0.10.0
libtpu: 0.0.40
codegen_flags: <defaults>
</compile_context>

<pallas_src>
import functools

import jax
import jax.numpy as jnp
from jax.experimental import pallas as pl
from jax.experimental.pallas import tpu as pltpu

KSIZE = 31         # depthwise conv kernel size
PAD = 15           # SAME padding
HALO = 16          # halo slab rows (>= PAD, sublane aligned, bf16-pack aligned)
GN_EPS = 1e-5      # torch GroupNorm default eps
GROUPS = 8
CONV_GROUP = 8     # taps per partial accumulator (bf16 MAC group size)


def _round_up(a, b):
    return (a + b - 1) // b * b


# ---------------------------------------------------------------------------
# Stage 1: pw_conv1 (Scaling folded) -> SiLU -> mask -> depthwise conv -> mask,
#          plus per-channel partial sums for the two-stage GroupNorm.
# ---------------------------------------------------------------------------
def _stage1_kernel(lens_ref,
                   x_ref, xnext_ref,
                   w1_ref, b1_ref, dww_ref, dwb_ref,
                   dw_ref, sum_ref, sq_ref,
                   ypad_ref):
    b = pl.program_id(0)
    ti = pl.program_id(1)
    tT = x_ref.shape[1]
    t0 = ti * tT
    length = lens_ref[b]
    conv_dtype = ypad_ref.dtype

    # Hoisted operands (used by main tile and the next-halo slab).
    w1 = w1_ref[...]                    # (H, H) bf16, Scaling.scale folded in
    b1 = b1_ref[...]                    # (1, H) f32,  Scaling.shift folded in

    def pw1(x_rows, base_row):
        """Linear (bf16 MXU, f32 acc) -> SiLU -> length mask."""
        n = x_rows.shape[0]
        y = jnp.dot(x_rows.astype(jnp.bfloat16), w1,
                    preferred_element_type=jnp.float32) + b1
        y = y * jax.nn.sigmoid(y)
        rows = base_row + jax.lax.broadcasted_iota(jnp.int32, (n, 1), 0)
        return jnp.where(rows < length, y, 0.0)

    y_main = pw1(x_ref[0], t0)                                   # (tT, H)
    y_next = pw1(xnext_ref[0], t0 + tT)     # (HALO, H); length mask zeroes last tile

    # Prev conv halo: carried across the sequential T axis.  Rows [tT, tT+HALO)
    # of the persistent ypad scratch are exactly the last HALO rows of the
    # previous tile's main block.  Zero at the first tile of every batch
    # (= left zero padding of the SAME conv).  Read BEFORE overwriting ypad.
    prev = ypad_ref[pl.ds(tT, HALO), :]
    prev = jnp.where(ti > 0, prev, jnp.zeros_like(prev))

    # Padded activation buffer: [prev halo | tile | next halo]
    ypad_ref[0:HALO, :] = prev
    ypad_ref[HALO:HALO + tT, :] = y_main.astype(conv_dtype)
    ypad_ref[HALO + tT:2 * HALO + tT, :] = y_next.astype(conv_dtype)

    # Depthwise conv (kernel 31, pad 15).  Output row t reads ypad rows
    # t + 1 + k for tap k.  MAC in groups of CONV_GROUP taps (bf16 when
    # conv_dtype is bf16); each group partial widened to f32 before combining.
    taps = dww_ref[...]                                          # (31, H)
    partials = []
    for g0 in range(0, KSIZE, CONV_GROUP):
        acc = None
        for k in range(g0, min(g0 + CONV_GROUP, KSIZE)):
            term = ypad_ref[pl.ds(k + HALO - PAD, tT), :] * taps[k:k + 1, :]
            acc = term if acc is None else acc + term
        partials.append(acc.astype(jnp.float32))
    while len(partials) > 1:                                     # pairwise combine
        partials = [partials[i] + partials[i + 1] if i + 1 < len(partials)
                    else partials[i] for i in range(0, len(partials), 2)]
    dw = partials[0] + dwb_ref[...]

    rows = t0 + jax.lax.broadcasted_iota(jnp.int32, (tT, 1), 0)
    dw = jnp.where(rows < length, dw, 0.0)                       # mask before GN

    dw_ref[0] = dw.astype(dw_ref.dtype)                          # bf16 HBM round trip

    # Two-stage GroupNorm: accumulate per-channel sum / sumsq (f32) across T tiles.
    @pl.when(ti == 0)
    def _():
        sum_ref[...] = jnp.zeros_like(sum_ref)
        sq_ref[...] = jnp.zeros_like(sq_ref)

    sum_ref[0] += jnp.sum(dw, axis=0, keepdims=True)
    sq_ref[0] += jnp.sum(dw * dw, axis=0, keepdims=True)


# ---------------------------------------------------------------------------
# Stage 2: folded GroupNorm affine -> SiLU -> pw_conv2 (bf16 MXU) -> residual.
# ---------------------------------------------------------------------------
def _stage2_kernel(x_ref, dw_ref, gamma_ref, beta_ref, w2_ref, b2_ref, o_ref):
    x = x_ref[0]                                                  # (tT, H) f32
    gn = dw_ref[0].astype(jnp.float32) * gamma_ref[0] + beta_ref[0]
    gn = gn * jax.nn.sigmoid(gn)
    # TODO(synk): F.dropout(p=0.1, training) omitted — inference-mode identity.
    y2 = jnp.dot(gn.astype(jnp.bfloat16), w2_ref[...],
                 preferred_element_type=jnp.float32) + b2_ref[...]
    o_ref[0] = x + y2


@functools.partial(jax.jit,
                   static_argnames=("block_t", "dw_conv_bf16", "vmem_limit_bytes"))
def conv_module_forward(x, x_lens, params, *, block_t=512, dw_conv_bf16=True,
                        vmem_limit_bytes=48 * 1024 * 1024):
    """x: (B, T, H) f32, x_lens: (B,) int32 valid lengths (prefix mask).

    dw_conv_bf16: packed-bf16 depthwise conv (recommended on v6e/v7x; set
    False on v5e which has no bf16 VALU).  H should be a multiple of 128 in
    production for lane-dense stores / full MXU width.
    """
    B, T, H = x.shape
    (scale, shift, w1, b1, dww, dwb, gng, gnb, w2, b2) = params

    # ---- T tiling: tT rows per grid step, multiple of the 16-row halo slab --
    nT = max(1, -(-T // block_t))
    tT = _round_up(-(-T // nT), HALO)
    T_pad = tT * nT
    n_slab = T_pad // HALO
    S = tT // HALO

    x_pad = jnp.pad(x, ((0, 0), (0, T_pad - T), (0, 0)))
    lens = x_lens.astype(jnp.int32)

    # Fold Scaling into pw_conv1 (exact in f32, then cast for the MXU):
    #   (scale*x + shift) @ w1 + b1  ==  x @ (diag(scale) @ w1) + (shift @ w1 + b1)
    w1_eff = (scale.reshape(H, 1) * w1).astype(jnp.bfloat16)
    b1_eff = (b1.reshape(1, H) + shift.reshape(1, H) @ w1).astype(jnp.float32)
    w2_bf = w2.astype(jnp.bfloat16)

    conv_dtype = jnp.bfloat16 if dw_conv_bf16 else jnp.float32
    dww_c = dww.astype(conv_dtype)

    full = lambda shp: pl.BlockSpec(shp, lambda b, t, lens: (0,) * len(shp))

    dw_pad, ch_sum, ch_sq = pl.pallas_call(
        _stage1_kernel,
        out_shape=(
            jax.ShapeDtypeStruct((B, T_pad, H), jnp.bfloat16),   # dw (bf16)
            jax.ShapeDtypeStruct((B, 1, H), jnp.float32),        # channel sum
            jax.ShapeDtypeStruct((B, 1, H), jnp.float32),        # channel sumsq
        ),
        grid_spec=pltpu.PrefetchScalarGridSpec(
            num_scalar_prefetch=1,
            grid=(B, nT),
            in_specs=[
                pl.BlockSpec((1, tT, H), lambda b, t, lens: (b, t, 0)),     # x tile
                pl.BlockSpec((1, HALO, H),                                  # next halo slab
                             lambda b, t, lens: (b, jnp.minimum((t + 1) * S,
                                                                n_slab - 1), 0)),
                full((H, H)),        # w1 (bf16, scale folded)
                full((1, H)),        # b1 (shift folded)
                full((KSIZE, H)),    # depthwise taps (conv dtype)
                full((1, H)),        # depthwise bias (f32)
            ],
            out_specs=[
                pl.BlockSpec((1, tT, H), lambda b, t, lens: (b, t, 0)),     # dw
                pl.BlockSpec((1, 1, H), lambda b, t, lens: (b, 0, 0)),      # sum
                pl.BlockSpec((1, 1, H), lambda b, t, lens: (b, 0, 0)),      # sumsq
            ],
            scratch_shapes=[pltpu.VMEM((tT + 2 * HALO, H), conv_dtype)],
        ),
        compiler_params=pltpu.CompilerParams(
            dimension_semantics=("parallel", "arbitrary"),
            vmem_limit_bytes=vmem_limit_bytes),
    )(lens, x_pad, x_pad, w1_eff, b1_eff, dww_c, dwb)

    # ---- GroupNorm finalize (tiny, plain JAX): fold into gamma'/beta' -------
    g = H // GROUPS
    count = jnp.float32(T * g)           # torch GN sees the length-T input
    cs = ch_sum[:, 0, :]                 # (B, H)
    cq = ch_sq[:, 0, :]
    g_sum = cs.reshape(B, GROUPS, g).sum(-1)         # (B, G)
    g_sq = cq.reshape(B, GROUPS, g).sum(-1)
    g_mean = g_sum / count
    g_var = jnp.maximum(g_sq / count - g_mean * g_mean, 0.0)
    inv = jax.lax.rsqrt(g_var + GN_EPS)              # (B, G)
    inv_c = jnp.repeat(inv, g, axis=1)               # (B, H)
    mean_c = jnp.repeat(g_mean, g, axis=1)
    gamma_p = (gng.reshape(1, H) * inv_c).reshape(B, 1, H)
    beta_p = (gnb.reshape(1, H) - mean_c * gng.reshape(1, H) * inv_c).reshape(B, 1, H)

    out_pad = pl.pallas_call(
        _stage2_kernel,
        out_shape=jax.ShapeDtypeStruct((B, T_pad, H), jnp.float32),
        grid_spec=pltpu.PrefetchScalarGridSpec(
            num_scalar_prefetch=0,
            grid=(B, nT),
            in_specs=[
                pl.BlockSpec((1, tT, H), lambda b, t: (b, t, 0)),   # x (residual)
                pl.BlockSpec((1, tT, H), lambda b, t: (b, t, 0)),   # dw (bf16)
                pl.BlockSpec((1, 1, H), lambda b, t: (b, 0, 0)),    # gamma'
                pl.BlockSpec((1, 1, H), lambda b, t: (b, 0, 0)),    # beta'
                pl.BlockSpec((H, H), lambda b, t: (0, 0)),          # w2 (bf16)
                pl.BlockSpec((1, H), lambda b, t: (0, 0)),          # b2
            ],
            out_specs=pl.BlockSpec((1, tT, H), lambda b, t: (b, t, 0)),
        ),
        compiler_params=pltpu.CompilerParams(
            dimension_semantics=("parallel", "parallel"),
            vmem_limit_bytes=vmem_limit_bytes),
    )(x_pad, dw_pad, gamma_p, beta_p, w2_bf, b2)

    return out_pad[:, :T, :]


# ---------------------------------------------------------------------------
# Pure-JAX reference (PyTorch eval semantics; matmuls mirrored in bf16).
# ---------------------------------------------------------------------------
def reference_forward(x, x_mask, params):
    (scale, shift, w1, b1, dww, dwb, gng, gnb, w2, b2) = params
    B, T, H = x.shape
    x2 = scale[None] * x + shift[None]
    y = jnp.einsum("bth,hk->btk", x2.astype(jnp.bfloat16),
                   w1.astype(jnp.bfloat16),
                   preferred_element_type=jnp.float32) + b1
    y = y * jax.nn.sigmoid(y)
    y = y * x_mask
    padded = jnp.pad(y, ((0, 0), (PAD, PAD), (0, 0)))
    acc = jnp.zeros_like(y)
    for k in range(KSIZE):
        acc = acc + padded[:, k:k + T, :] * dww[k][None, None, :]
    dw = (acc + dwb) * x_mask
    g = H // GROUPS
    r = dw.reshape(B, T, GROUPS, g)
    mean = r.mean(axis=(1, 3), keepdims=True)
    var = ((r - mean) ** 2).mean(axis=(1, 3), keepdims=True)
    gn = ((r - mean) / jnp.sqrt(var + GN_EPS)).reshape(B, T, H) * gng + gnb
    gn = gn * jax.nn.sigmoid(gn)
    y2 = jnp.einsum("bth,hk->btk", gn.astype(jnp.bfloat16),
                    w2.astype(jnp.bfloat16),
                    preferred_element_type=jnp.float32) + b2
    return x + y2


def init_params(key, hdim):
    ks = jax.random.split(key, 10)
    s = 0.1
    scale = jnp.ones((1, hdim), jnp.float32)
    shift = jnp.zeros((1, hdim), jnp.float32)
    w1 = jax.random.normal(ks[0], (hdim, hdim), jnp.float32) * s
    b1 = jax.random.normal(ks[1], (1, hdim), jnp.float32) * s
    dww = jax.random.normal(ks[2], (KSIZE, hdim), jnp.float32) * s
    dwb = jax.random.normal(ks[3], (1, hdim), jnp.float32) * s
    gng = jnp.ones((1, hdim), jnp.float32)
    gnb = jnp.zeros((1, hdim), jnp.float32)
    w2 = jax.random.normal(ks[4], (hdim, hdim), jnp.float32) * s
    b2 = jax.random.normal(ks[5], (1, hdim), jnp.float32) * s
    return (scale, shift, w1, b1, dww, dwb, gng, gnb, w2, b2)


if __name__ == "__main__":
    B, T, H = 2, 48, 32
    key = jax.random.PRNGKey(0)
    kx, kp = jax.random.split(key)
    x = jax.random.normal(kx, (B, T, H), jnp.float32)
    # first sequence full length, second padded to 37
    lengths = jnp.array([T, 37], jnp.int32)
    x_mask = (jnp.arange(T)[None, :] < lengths[:, None]).astype(jnp.float32)[:, :, None]
    params = init_params(kp, H)

    ref = reference_forward(x, x_mask, params)

    # Multi-tile path (block_t=16 -> 3 T-tiles): exercises the carried conv
    # halo and the two-pass GroupNorm.  f32 depthwise conv (v5e-style config);
    # the only low-precision deltas vs the reference are the bf16 dw HBM
    # round trip and the folded GN affine.
    out_a = conv_module_forward(x, lengths, params, block_t=16,
                                dw_conv_bf16=False)
    out_a = jax.block_until_ready(out_a)
    assert out_a.shape == (B, T, H)
    err_a = jnp.max(jnp.abs(out_a - ref))
    assert jnp.allclose(out_a, ref, rtol=5e-3, atol=5e-3), f"max abs diff {err_a}"

    # Default single-tile path with packed-bf16 depthwise conv (v6e/v7x
    # config); looser tolerance accounts for bf16 tap MACs.
    out_b = conv_module_forward(x, lengths, params, block_t=512,
                                dw_conv_bf16=True)
    out_b = jax.block_until_ready(out_b)
    err_b = jnp.max(jnp.abs(out_b - ref))
    assert jnp.allclose(out_b, ref, rtol=2e-2, atol=2e-2), f"max abs diff {err_b}"

    print("KERNEL_OK")
</pallas_src>

<mosaic_0001>
module attributes {stable_mosaic.version = 11 : i64} {
  func.func @_stage2_kernel(%arg0: i32, %arg1: i32, %arg2: memref<1x16x32xf32, #tpu.memory_space<vmem>>, %arg3: memref<1x16x32xbf16, #tpu.memory_space<vmem>>, %arg4: memref<1x1x32xf32, #tpu.memory_space<vmem>>, %arg5: memref<1x1x32xf32, #tpu.memory_space<vmem>>, %arg6: memref<32x32xbf16, #tpu.memory_space<vmem>>, %arg7: memref<1x32xf32, #tpu.memory_space<vmem>>, %arg8: memref<1x16x32xf32, #tpu.memory_space<vmem>>) attributes {dimension_semantics = [#tpu.dimension_semantics<parallel>, #tpu.dimension_semantics<parallel>], iteration_bounds = array<i64: 2, 3>, scalar_prefetch = 0 : i64, scratch_operands = 0 : i64, tpu.core_type = #tpu.core_type<tc>, window_params = [{transform_indices = @transform_0, window_bounds = array<i64: 1, 16, 32>}, {transform_indices = @transform_1, window_bounds = array<i64: 1, 16, 32>}, {transform_indices = @transform_2, window_bounds = array<i64: 1, 1, 32>}, {transform_indices = @transform_3, window_bounds = array<i64: 1, 1, 32>}, {pipeline_mode = #tpu.pipeline_mode<synchronous>, transform_indices = @transform_4, window_bounds = array<i64: 32, 32>}, {pipeline_mode = #tpu.pipeline_mode<synchronous>, transform_indices = @transform_5, window_bounds = array<i64: 1, 32>}, {transform_indices = @transform_6, window_bounds = array<i64: 1, 16, 32>}]} {
    %c0 = arith.constant 0 : index
    %c0_0 = arith.constant 0 : index
    %c0_1 = arith.constant 0 : index
    %0 = vector.load %arg2[%c0, %c0_0, %c0_1] : memref<1x16x32xf32, #tpu.memory_space<vmem>>, vector<1x16x32xf32>
    %1 = vector.shape_cast %0 : vector<1x16x32xf32> to vector<16x32xf32>
    %c0_2 = arith.constant 0 : index
    %c0_3 = arith.constant 0 : index
    %c0_4 = arith.constant 0 : index
    %2 = vector.load %arg3[%c0_2, %c0_3, %c0_4] : memref<1x16x32xbf16, #tpu.memory_space<vmem>>, vector<1x16x32xbf16>
    %3 = vector.shape_cast %2 : vector<1x16x32xbf16> to vector<16x32xbf16>
    %4 = arith.extf %3 : vector<16x32xbf16> to vector<16x32xf32>
    %c0_5 = arith.constant 0 : index
    %c0_6 = arith.constant 0 : index
    %c0_7 = arith.constant 0 : index
    %5 = vector.load %arg4[%c0_5, %c0_6, %c0_7] : memref<1x1x32xf32, #tpu.memory_space<vmem>>, vector<1x1x32xf32>
    %6 = vector.shape_cast %5 : vector<1x1x32xf32> to vector<1x32xf32>
    %7 = vector.broadcast %6 : vector<1x32xf32> to vector<16x32xf32>
    %8 = arith.mulf %4, %7 : vector<16x32xf32>
    %c0_8 = arith.constant 0 : index
    %c0_9 = arith.constant 0 : index
    %c0_10 = arith.constant 0 : index
    %9 = vector.load %arg5[%c0_8, %c0_9, %c0_10] : memref<1x1x32xf32, #tpu.memory_space<vmem>>, vector<1x1x32xf32>
    %10 = vector.shape_cast %9 : vector<1x1x32xf32> to vector<1x32xf32>
    %11 = vector.broadcast %10 : vector<1x32xf32> to vector<16x32xf32>
    %12 = arith.addf %8, %11 : vector<16x32xf32>
    %13 = arith.negf %12 : vector<16x32xf32>
    %14 = math.exp %13 : vector<16x32xf32>
    %cst = arith.constant 1.000000e+00 : f32
    %15 = vector.broadcast %cst : f32 to vector<16x32xf32>
    %16 = arith.addf %15, %14 : vector<16x32xf32>
    %17 = arith.divf %15, %16 : vector<16x32xf32>
    %18 = arith.mulf %12, %17 : vector<16x32xf32>
    %19 = arith.truncf %18 : vector<16x32xf32> to vector<16x32xbf16>
    %c0_11 = arith.constant 0 : index
    %c0_12 = arith.constant 0 : index
    %20 = vector.load %arg6[%c0_11, %c0_12] : memref<32x32xbf16, #tpu.memory_space<vmem>>, vector<32x32xbf16>
    %cst_13 = arith.constant dense<0.000000e+00> : vector<16x32xf32>
    %21 = tpu.matmul %19, %20, %cst_13 {dimension_numbers = #tpu.dot_dimension_numbers<[1], [0], [0], [1], [0, 0, 1, 1], [], []>} : vector<16x32xbf16>, vector<32x32xbf16>, vector<16x32xf32> -> vector<16x32xf32>
    %c0_14 = arith.constant 0 : index
    %c0_15 = arith.constant 0 : index
    %22 = vector.load %arg7[%c0_14, %c0_15] : memref<1x32xf32, #tpu.memory_space<vmem>>, vector<1x32xf32>
    %23 = vector.broadcast %22 : vector<1x32xf32> to vector<16x32xf32>
    %24 = arith.addf %21, %23 : vector<16x32xf32>
    %25 = arith.addf %1, %24 : vector<16x32xf32>
    %c0_16 = arith.constant 0 : index
    %c0_17 = arith.constant 0 : index
    %c0_18 = arith.constant 0 : index
    %26 = vector.load %arg8[%c0_16, %c0_17, %c0_18] : memref<1x16x32xf32, #tpu.memory_space<vmem>>, vector<1x16x32xf32>
    %27 = vector.shape_cast %26 : vector<1x16x32xf32> to vector<16x32xf32>
    %28 = vector.shape_cast %25 : vector<16x32xf32> to vector<1x16x32xf32>
    tpu.vector_store %arg8[%c0_16, %c0_17, %c0_18], %28 {strides = array<i32>} : memref<1x16x32xf32, #tpu.memory_space<vmem>>, vector<1x16x32xf32>,
    return
  }
  func.func @transform_0(%arg0: i32, %arg1: i32) -> (i32, i32, i32) {
    %c0_i32 = arith.constant 0 : i32
    %c0_i32_0 = arith.constant 0 : i32
    return %arg0, %arg1, %c0_i32 : i32, i32, i32
  }
  func.func @transform_1(%arg0: i32, %arg1: i32) -> (i32, i32, i32) {
    %c0_i32 = arith.constant 0 : i32
    %c0_i32_0 = arith.constant 0 : i32
    return %arg0, %arg1, %c0_i32 : i32, i32, i32
  }
  func.func @transform_2(%arg0: i32, %arg1: i32) -> (i32, i32, i32) {
    %c0_i32 = arith.constant 0 : i32
    %c0_i32_0 = arith.constant 0 : i32
    %c0_i32_1 = arith.constant 0 : i32
    return %arg0, %c0_i32, %c0_i32_0 : i32, i32, i32
  }
  func.func @transform_3(%arg0: i32, %arg1: i32) -> (i32, i32, i32) {
    %c0_i32 = arith.constant 0 : i32
    %c0_i32_0 = arith.constant 0 : i32
    %c0_i32_1 = arith.constant 0 : i32
    return %arg0, %c0_i32, %c0_i32_0 : i32, i32, i32
  }
  func.func @transform_4(%arg0: i32, %arg1: i32) -> (i32, i32) {
    %c0_i32 = arith.constant 0 : i32
    %c0_i32_0 = arith.constant 0 : i32
    %c0_i32_1 = arith.constant 0 : i32
    return %c0_i32, %c0_i32_0 : i32, i32
  }
  func.func @transform_5(%arg0: i32, %arg1: i32) -> (i32, i32) {
    %c0_i32 = arith.constant 0 : i32
    %c0_i32_0 = arith.constant 0 : i32
    %c0_i32_1 = arith.constant 0 : i32
    return %c0_i32, %c0_i32_0 : i32, i32
  }
  func.func @transform_6(%arg0: i32, %arg1: i32) -> (i32, i32, i32) {
    %c0_i32 = arith.constant 0 : i32
    %c0_i32_0 = arith.constant 0 : i32
    return %arg0, %arg1, %c0_i32 : i32, i32, i32
  }
}

module attributes {stable_mosaic.version = 11 : i64} {
  func.func @_stage1_kernel(%arg0: i32, %arg1: i32, %arg2: memref<2xi32, #tpu.memory_space<smem>>, %arg3: memref<1x16x32xf32, #tpu.memory_space<vmem>>, %arg4: memref<1x16x32xf32, #tpu.memory_space<vmem>>, %arg5: memref<32x32xbf16, #tpu.memory_space<vmem>>, %arg6: memref<1x32xf32, #tpu.memory_space<vmem>>, %arg7: memref<31x32xf32, #tpu.memory_space<vmem>>, %arg8: memref<1x32xf32, #tpu.memory_space<vmem>>, %arg9: memref<1x16x32xbf16, #tpu.memory_space<vmem>>, %arg10: memref<1x1x32xf32, #tpu.memory_space<vmem>>, %arg11: memref<1x1x32xf32, #tpu.memory_space<vmem>>, %arg12: memref<48x32xf32, #tpu.memory_space<vmem>>) attributes {dimension_semantics = [#tpu.dimension_semantics<parallel>, #tpu.dimension_semantics<arbitrary>], iteration_bounds = array<i64: 2, 3>, scalar_prefetch = 1 : i64, scratch_operands = 1 : i64, tpu.core_type = #tpu.core_type<tc>, window_params = [{transform_indices = @transform_0, window_bounds = array<i64: 1, 16, 32>}, {transform_indices = @transform_1, window_bounds = array<i64: 1, 16, 32>}, {pipeline_mode = #tpu.pipeline_mode<synchronous>, transform_indices = @transform_2, window_bounds = array<i64: 32, 32>}, {pipeline_mode = #tpu.pipeline_mode<synchronous>, transform_indices = @transform_3, window_bounds = array<i64: 1, 32>}, {pipeline_mode = #tpu.pipeline_mode<synchronous>, transform_indices = @transform_4, window_bounds = array<i64: 31, 32>}, {pipeline_mode = #tpu.pipeline_mode<synchronous>, transform_indices = @transform_5, window_bounds = array<i64: 1, 32>}, {transform_indices = @transform_6, window_bounds = array<i64: 1, 16, 32>}, {transform_indices = @transform_7, window_bounds = array<i64: 1, 1, 32>}, {transform_indices = @transform_8, window_bounds = array<i64: 1, 1, 32>}]} {
    %c16_i32 = arith.constant 16 : i32
    %0 = arith.muli %arg1, %c16_i32 : i32
    %1 = arith.index_cast %arg0 : i32 to index
    %2 = memref.load %arg2[%1] : memref<2xi32, #tpu.memory_space<smem>>
    %c0 = arith.constant 0 : index
    %c0_0 = arith.constant 0 : index
    %3 = vector.load %arg5[%c0, %c0_0] : memref<32x32xbf16, #tpu.memory_space<vmem>>, vector<32x32xbf16>
    %c0_1 = arith.constant 0 : index
    %c0_2 = arith.constant 0 : index
    %4 = vector.load %arg6[%c0_1, %c0_2] : memref<1x32xf32, #tpu.memory_space<vmem>>, vector<1x32xf32>
    %c0_3 = arith.constant 0 : index
    %c0_4 = arith.constant 0 : index
    %c0_5 = arith.constant 0 : index
    %5 = vector.load %arg3[%c0_3, %c0_4, %c0_5] : memref<1x16x32xf32, #tpu.memory_space<vmem>>, vector<1x16x32xf32>
    %6 = vector.shape_cast %5 : vector<1x16x32xf32> to vector<16x32xf32>
    %7 = arith.truncf %6 : vector<16x32xf32> to vector<16x32xbf16>
    %cst = arith.constant dense<0.000000e+00> : vector<16x32xf32>
    %8 = tpu.matmul %7, %3, %cst {dimension_numbers = #tpu.dot_dimension_numbers<[1], [0], [0], [1], [0, 0, 1, 1], [], []>} : vector<16x32xbf16>, vector<32x32xbf16>, vector<16x32xf32> -> vector<16x32xf32>
    %9 = vector.broadcast %4 : vector<1x32xf32> to vector<16x32xf32>
    %10 = arith.addf %8, %9 : vector<16x32xf32>
    %11 = arith.negf %10 : vector<16x32xf32>
    %12 = math.exp %11 : vector<16x32xf32>
    %cst_6 = arith.constant 1.000000e+00 : f32
    %13 = vector.broadcast %cst_6 : f32 to vector<16x32xf32>
    %14 = arith.addf %13, %12 : vector<16x32xf32>
    %15 = arith.divf %13, %14 : vector<16x32xf32>
    %16 = arith.mulf %10, %15 : vector<16x32xf32>
    %17 = tpu.iota {dimensions = array<i32: 0>} : vector<16x1xi32>
    %18 = vector.broadcast %0 : i32 to vector<16x1xi32>
    %19 = arith.addi %18, %17 : vector<16x1xi32>
    %20 = vector.broadcast %2 : i32 to vector<16x1xi32>
    %21 = arith.cmpi slt, %19, %20 : vector<16x1xi32>
    %cst_7 = arith.constant 0.000000e+00 : f32
    %22 = vector.shape_cast %21 : vector<16x1xi1> to vector<16x1xi1>
    %23 = vector.broadcast %22 : vector<16x1xi1> to vector<16x32xi1>
    %24 = vector.broadcast %cst_7 : f32 to vector<16x32xf32>
    %25 = arith.select %23, %16, %24 : vector<16x32xi1>, vector<16x32xf32>
    %c0_8 = arith.constant 0 : index
    %c0_9 = arith.constant 0 : index
    %c0_10 = arith.constant 0 : index
    %26 = vector.load %arg4[%c0_8, %c0_9, %c0_10] : memref<1x16x32xf32, #tpu.memory_space<vmem>>, vector<1x16x32xf32>
    %27 = vector.shape_cast %26 : vector<1x16x32xf32> to vector<16x32xf32>
    %c16_i32_11 = arith.constant 16 : i32
    %28 = arith.addi %0, %c16_i32_11 : i32
    %29 = arith.truncf %27 : vector<16x32xf32> to vector<16x32xbf16>
    %cst_12 = arith.constant dense<0.000000e+00> : vector<16x32xf32>
    %30 = tpu.matmul %29, %3, %cst_12 {dimension_numbers = #tpu.dot_dimension_numbers<[1], [0], [0], [1], [0, 0, 1, 1], [], []>} : vector<16x32xbf16>, vector<32x32xbf16>, vector<16x32xf32> -> vector<16x32xf32>
    %31 = vector.broadcast %4 : vector<1x32xf32> to vector<16x32xf32>
    %32 = arith.addf %30, %31 : vector<16x32xf32>
    %33 = arith.negf %32 : vector<16x32xf32>
    %34 = math.exp %33 : vector<16x32xf32>
    %cst_13 = arith.constant 1.000000e+00 : f32
    %35 = vector.broadcast %cst_13 : f32 to vector<16x32xf32>
    %36 = arith.addf %35, %34 : vector<16x32xf32>
    %37 = arith.divf %35, %36 : vector<16x32xf32>
    %38 = arith.mulf %32, %37 : vector<16x32xf32>
    %39 = tpu.iota {dimensions = array<i32: 0>} : vector<16x1xi32>
    %40 = vector.broadcast %28 : i32 to vector<16x1xi32>
    %41 = arith.addi %40, %39 : vector<16x1xi32>
    %42 = vector.broadcast %2 : i32 to vector<16x1xi32>
    %43 = arith.cmpi slt, %41, %42 : vector<16x1xi32>
    %cst_14 = arith.constant 0.000000e+00 : f32
    %44 = vector.shape_cast %43 : vector<16x1xi1> to vector<16x1xi1>
    %45 = vector.broadcast %44 : vector<16x1xi1> to vector<16x32xi1>
    %46 = vector.broadcast %cst_14 : f32 to vector<16x32xf32>
    %47 = arith.select %45, %38, %46 : vector<16x32xi1>, vector<16x32xf32>
    %c16 = arith.constant 16 : index
    %c0_15 = arith.constant 0 : index
    %48 = vector.load %arg12[%c16, %c0_15] : memref<48x32xf32, #tpu.memory_space<vmem>>, vector<16x32xf32>
    %c0_i32 = arith.constant 0 : i32
    %49 = arith.cmpi sgt, %arg1, %c0_i32 : i32
    %cst_16 = arith.constant 0.000000e+00 : f32
    %50 = vector.broadcast %cst_16 : f32 to vector<16x32xf32>
    %51 = arith.select %49, %48, %50 : vector<16x32xf32>
    %c0_17 = arith.constant 0 : index
    %c0_18 = arith.constant 0 : index
    %52 = vector.load %arg12[%c0_17, %c0_18] : memref<48x32xf32, #tpu.memory_space<vmem>>, vector<16x32xf32>
    tpu.vector_store %arg12[%c0_17, %c0_18], %51 {strides = array<i32>} : memref<48x32xf32, #tpu.memory_space<vmem>>, vector<16x32xf32>,
    %c16_19 = arith.constant 16 : index
    %c0_20 = arith.constant 0 : index
    %53 = vector.load %arg12[%c16_19, %c0_20] : memref<48x32xf32, #tpu.memory_space<vmem>>, vector<16x32xf32>
    tpu.vector_store %arg12[%c16_19, %c0_20], %25 {strides = array<i32>} : memref<48x32xf32, #tpu.memory_space<vmem>>, vector<16x32xf32>,
    %c32 = arith.constant 32 : index
    %c0_21 = arith.constant 0 : index
    %54 = vector.load %arg12[%c32, %c0_21] : memref<48x32xf32, #tpu.memory_space<vmem>>, vector<16x32xf32>
    tpu.vector_store %arg12[%c32, %c0_21], %47 {strides = array<i32>} : memref<48x32xf32, #tpu.memory_space<vmem>>, vector<16x32xf32>,
    %c0_22 = arith.constant 0 : index
    %c0_23 = arith.constant 0 : index
    %55 = vector.load %arg7[%c0_22, %c0_23] : memref<31x32xf32, #tpu.memory_space<vmem>>, vector<31x32xf32>
    %c1 = arith.constant 1 : index
    %c0_24 = arith.constant 0 : index
    %56 = vector.load %arg12[%c1, %c0_24] : memref<48x32xf32, #tpu.memory_space<vmem>>, vector<16x32xf32>
    %57 = vector.extract_strided_slice %55 {offsets = [0, 0], sizes = [1, 32], strides = [1, 1]} : vector<31x32xf32> to vector<1x32xf32>
    %58 = vector.broadcast %57 : vector<1x32xf32> to vector<16x32xf32>
    %59 = arith.mulf %56, %58 : vector<16x32xf32>
    %c2 = arith.constant 2 : index
    %c0_25 = arith.constant 0 : index
    %60 = vector.load %arg12[%c2, %c0_25] : memref<48x32xf32, #tpu.memory_space<vmem>>, vector<16x32xf32>
    %61 = vector.extract_strided_slice %55 {offsets = [1, 0], sizes = [1, 32], strides = [1, 1]} : vector<31x32xf32> to vector<1x32xf32>
    %62 = vector.broadcast %61 : vector<1x32xf32> to vector<16x32xf32>
    %63 = arith.mulf %60, %62 : vector<16x32xf32>
    %64 = arith.addf %59, %63 : vector<16x32xf32>
    %c3 = arith.constant 3 : index
    %c0_26 = arith.constant 0 : index
    %65 = vector.load %arg12[%c3, %c0_26] : memref<48x32xf32, #tpu.memory_space<vmem>>, vector<16x32xf32>
    %66 = vector.extract_strided_slice %55 {offsets = [2, 0], sizes = [1, 32], strides = [1, 1]} : vector<31x32xf32> to vector<1x32xf32>
    %67 = vector.broadcast %66 : vector<1x32xf32> to vector<16x32xf32>
    %68 = arith.mulf %65, %67 : vector<16x32xf32>
    %69 = arith.addf %64, %68 : vector<16x32xf32>
    %c4 = arith.constant 4 : index
    %c0_27 = arith.constant 0 : index
    %70 = vector.load %arg12[%c4, %c0_27] : memref<48x32xf32, #tpu.memory_space<vmem>>, vector<16x32xf32>
    %71 = vector.extract_strided_slice %55 {offsets = [3, 0], sizes = [1, 32], strides = [1, 1]} : vector<31x32xf32> to vector<1x32xf32>
    %72 = vector.broadcast %71 : vector<1x32xf32> to vector<16x32xf32>
    %73 = arith.mulf %70, %72 : vector<16x32xf32>
    %74 = arith.addf %69, %73 : vector<16x32xf32>
    %c5 = arith.constant 5 : index
    %c0_28 = arith.constant 0 : index
    %75 = vector.load %arg12[%c5, %c0_28] : memref<48x32xf32, #tpu.memory_space<vmem>>, vector<16x32xf32>
    %76 = vector.extract_strided_slice %55 {offsets = [4, 0], sizes = [1, 32], strides = [1, 1]} : vector<31x32xf32> to vector<1x32xf32>
    %77 = vector.broadcast %76 : vector<1x32xf32> to vector<16x32xf32>
    %78 = arith.mulf %75, %77 : vector<16x32xf32>
    %79 = arith.addf %74, %78 : vector<16x32xf32>
    %c6 = arith.constant 6 : index
    %c0_29 = arith.constant 0 : index
    %80 = vector.load %arg12[%c6, %c0_29] : memref<48x32xf32, #tpu.memory_space<vmem>>, vector<16x32xf32>
    %81 = vector.extract_strided_slice %55 {offsets = [5, 0], sizes = [1, 32], strides = [1, 1]} : vector<31x32xf32> to vector<1x32xf32>
    %82 = vector.broadcast %81 : vector<1x32xf32> to vector<16x32xf32>
    %83 = arith.mulf %80, %82 : vector<16x32xf32>
    %84 = arith.addf %79, %83 : vector<16x32xf32>
    %c7 = arith.constant 7 : index
    %c0_30 = arith.constant 0 : index
    %85 = vector.load %arg12[%c7, %c0_30] : memref<48x32xf32, #tpu.memory_space<vmem>>, vector<16x32xf32>
    %86 = vector.extract_strided_slice %55 {offsets = [6, 0], sizes = [1, 32], strides = [1, 1]} : vector<31x32xf32> to vector<1x32xf32>
    %87 = vector.broadcast %86 : vector<1x32xf32> to vector<16x32xf32>
    %88 = arith.mulf %85, %87 : vector<16x32xf32>
    %89 = arith.addf %84, %88 : vector<16x32xf32>
    %c8 = arith.constant 8 : index
    %c0_31 = arith.constant 0 : index
    %90 = vector.load %arg12[%c8, %c0_31] : memref<48x32xf32, #tpu.memory_space<vmem>>, vector<16x32xf32>
    %91 = vector.extract_strided_slice %55 {offsets = [7, 0], sizes = [1, 32], strides = [1, 1]} : vector<31x32xf32> to vector<1x32xf32>
    %92 = vector.broadcast %91 : vector<1x32xf32> to vector<16x32xf32>
    %93 = arith.mulf %90, %92 : vector<16x32xf32>
    %94 = arith.addf %89, %93 : vector<16x32xf32>
    %c9 = arith.constant 9 : index
    %c0_32 = arith.constant 0 : index
    %95 = vector.load %arg12[%c9, %c0_32] : memref<48x32xf32, #tpu.memory_space<vmem>>, vector<16x32xf32>
    %96 = vector.extract_strided_slice %55 {offsets = [8, 0], sizes = [1, 32], strides = [1, 1]} : vector<31x32xf32> to vector<1x32xf32>
    %97 = vector.broadcast %96 : vector<1x32xf32> to vector<16x32xf32>
    %98 = arith.mulf %95, %97 : vector<16x32xf32>
    %c10 = arith.constant 10 : index
    %c0_33 = arith.constant 0 : index
    %99 = vector.load %arg12[%c10, %c0_33] : memref<48x32xf32, #tpu.memory_space<vmem>>, vector<16x32xf32>
    %100 = vector.extract_strided_slice %55 {offsets = [9, 0], sizes = [1, 32], strides = [1, 1]} : vector<31x32xf32> to vector<1x32xf32>
    %101 = vector.broadcast %100 : vector<1x32xf32> to vector<16x32xf32>
    %102 = arith.mulf %99, %101 : vector<16x32xf32>
    %103 = arith.addf %98, %102 : vector<16x32xf32>
    %c11 = arith.constant 11 : index
    %c0_34 = arith.constant 0 : index
    %104 = vector.load %arg12[%c11, %c0_34] : memref<48x32xf32, #tpu.memory_space<vmem>>, vector<16x32xf32>
    %105 = vector.extract_strided_slice %55 {offsets = [10, 0], sizes = [1, 32], strides = [1, 1]} : vector<31x32xf32> to vector<1x32xf32>
    %106 = vector.broadcast %105 : vector<1x32xf32> to vector<16x32xf32>
    %107 = arith.mulf %104, %106 : vector<16x32xf32>
    %108 = arith.addf %103, %107 : vector<16x32xf32>
    %c12 = arith.constant 12 : index
    %c0_35 = arith.constant 0 : index
    %109 = vector.load %arg12[%c12, %c0_35] : memref<48x32xf32, #tpu.memory_space<vmem>>, vector<16x32xf32>
    %110 = vector.extract_strided_slice %55 {offsets = [11, 0], sizes = [1, 32], strides = [1, 1]} : vector<31x32xf32> to vector<1x32xf32>
    %111 = vector.broadcast %110 : vector<1x32xf32> to vector<16x32xf32>
    %112 = arith.mulf %109, %111 : vector<16x32xf32>
    %113 = arith.addf %108, %112 : vector<16x32xf32>
    %c13 = arith.constant 13 : index
    %c0_36 = arith.constant 0 : index
    %114 = vector.load %arg12[%c13, %c0_36] : memref<48x32xf32, #tpu.memory_space<vmem>>, vector<16x32xf32>
    %115 = vector.extract_strided_slice %55 {offsets = [12, 0], sizes = [1, 32], strides = [1, 1]} : vector<31x32xf32> to vector<1x32xf32>
    %116 = vector.broadcast %115 : vector<1x32xf32> to vector<16x32xf32>
    %117 = arith.mulf %114, %116 : vector<16x32xf32>
    %118 = arith.addf %113, %117 : vector<16x32xf32>
    %c14 = arith.constant 14 : index
    %c0_37 = arith.constant 0 : index
    %119 = vector.load %arg12[%c14, %c0_37] : memref<48x32xf32, #tpu.memory_space<vmem>>, vector<16x32xf32>
    %120 = vector.extract_strided_slice %55 {offsets = [13, 0], sizes = [1, 32], strides = [1, 1]} : vector<31x32xf32> to vector<1x32xf32>
    %121 = vector.broadcast %120 : vector<1x32xf32> to vector<16x32xf32>
    %122 = arith.mulf %119, %121 : vector<16x32xf32>
    %123 = arith.addf %118, %122 : vector<16x32xf32>
    %c15 = arith.constant 15 : index
    %c0_38 = arith.constant 0 : index
    %124 = vector.load %arg12[%c15, %c0_38] : memref<48x32xf32, #tpu.memory_space<vmem>>, vector<16x32xf32>
    %125 = vector.extract_strided_slice %55 {offsets = [14, 0], sizes = [1, 32], strides = [1, 1]} : vector<31x32xf32> to vector<1x32xf32>
    %126 = vector.broadcast %125 : vector<1x32xf32> to vector<16x32xf32>
    %127 = arith.mulf %124, %126 : vector<16x32xf32>
    %128 = arith.addf %123, %127 : vector<16x32xf32>
    %c16_39 = arith.constant 16 : index
    %c0_40 = arith.constant 0 : index
    %129 = vector.load %arg12[%c16_39, %c0_40] : memref<48x32xf32, #tpu.memory_space<vmem>>, vector<16x32xf32>
    %130 = vector.extract_strided_slice %55 {offsets = [15, 0], sizes = [1, 32], strides = [1, 1]} : vector<31x32xf32> to vector<1x32xf32>
    %131 = vector.broadcast %130 : vector<1x32xf32> to vector<16x32xf32>
    %132 = arith.mulf %129, %131 : vector<16x32xf32>
    %133 = arith.addf %128, %132 : vector<16x32xf32>
    %c17 = arith.constant 17 : index
    %c0_41 = arith.constant 0 : index
    %134 = vector.load %arg12[%c17, %c0_41] : memref<48x32xf32, #tpu.memory_space<vmem>>, vector<16x32xf32>
    %135 = vector.extract_strided_slice %55 {offsets = [16, 0], sizes = [1, 32], strides = [1, 1]} : vector<31x32xf32> to vector<1x32xf32>
    %136 = vector.broadcast %135 : vector<1x32xf32> to vector<16x32xf32>
    %137 = arith.mulf %134, %136 : vector<16x32xf32>
    %c18 = arith.constant 18 : index
    %c0_42 = arith.constant 0 : index
    %138 = vector.load %arg12[%c18, %c0_42] : memref<48x32xf32, #tpu.memory_space<vmem>>, vector<16x32xf32>
    %139 = vector.extract_strided_slice %55 {offsets = [17, 0], sizes = [1, 32], strides = [1, 1]} : vector<31x32xf32> to vector<1x32xf32>
    %140 = vector.broadcast %139 : vector<1x32xf32> to vector<16x32xf32>
    %141 = arith.mulf %138, %140 : vector<16x32xf32>
    %142 = arith.addf %137, %141 : vector<16x32xf32>
    %c19 = arith.constant 19 : index
    %c0_43 = arith.constant 0 : index
    %143 = vector.load %arg12[%c19, %c0_43] : memref<48x32xf32, #tpu.memory_space<vmem>>, vector<16x32xf32>
    %144 = vector.extract_strided_slice %55 {offsets = [18, 0], sizes = [1, 32], strides = [1, 1]} : vector<31x32xf32> to vector<1x32xf32>
    %145 = vector.broadcast %144 : vector<1x32xf32> to vector<16x32xf32>
    %146 = arith.mulf %143, %145 : vector<16x32xf32>
    %147 = arith.addf %142, %146 : vector<16x32xf32>
    %c20 = arith.constant 20 : index
    %c0_44 = arith.constant 0 : index
    %148 = vector.load %arg12[%c20, %c0_44] : memref<48x32xf32, #tpu.memory_space<vmem>>, vector<16x32xf32>
    %149 = vector.extract_strided_slice %55 {offsets = [19, 0], sizes = [1, 32], strides = [1, 1]} : vector<31x32xf32> to vector<1x32xf32>
    %150 = vector.broadcast %149 : vector<1x32xf32> to vector<16x32xf32>
    %151 = arith.mulf %148, %150 : vector<16x32xf32>
    %152 = arith.addf %147, %151 : vector<16x32xf32>
    %c21 = arith.constant 21 : index
    %c0_45 = arith.constant 0 : index
    %153 = vector.load %arg12[%c21, %c0_45] : memref<48x32xf32, #tpu.memory_space<vmem>>, vector<16x32xf32>
    %154 = vector.extract_strided_slice %55 {offsets = [20, 0], sizes = [1, 32], strides = [1, 1]} : vector<31x32xf32> to vector<1x32xf32>
    %155 = vector.broadcast %154 : vector<1x32xf32> to vector<16x32xf32>
    %156 = arith.mulf %153, %155 : vector<16x32xf32>
    %157 = arith.addf %152, %156 : vector<16x32xf32>
    %c22 = arith.constant 22 : index
    %c0_46 = arith.constant 0 : index
    %158 = vector.load %arg12[%c22, %c0_46] : memref<48x32xf32, #tpu.memory_space<vmem>>, vector<16x32xf32>
    %159 = vector.extract_strided_slice %55 {offsets = [21, 0], sizes = [1, 32], strides = [1, 1]} : vector<31x32xf32> to vector<1x32xf32>
    %160 = vector.broadcast %159 : vector<1x32xf32> to vector<16x32xf32>
    %161 = arith.mulf %158, %160 : vector<16x32xf32>
    %162 = arith.addf %157, %161 : vector<16x32xf32>
    %c23 = arith.constant 23 : index
    %c0_47 = arith.constant 0 : index
    %163 = vector.load %arg12[%c23, %c0_47] : memref<48x32xf32, #tpu.memory_space<vmem>>, vector<16x32xf32>
    %164 = vector.extract_strided_slice %55 {offsets = [22, 0], sizes = [1, 32], strides = [1, 1]} : vector<31x32xf32> to vector<1x32xf32>
    %165 = vector.broadcast %164 : vector<1x32xf32> to vector<16x32xf32>
    %166 = arith.mulf %163, %165 : vector<16x32xf32>
    %167 = arith.addf %162, %166 : vector<16x32xf32>
    %c24 = arith.constant 24 : index
    %c0_48 = arith.constant 0 : index
    %168 = vector.load %arg12[%c24, %c0_48] : memref<48x32xf32, #tpu.memory_space<vmem>>, vector<16x32xf32>
    %169 = vector.extract_strided_slice %55 {offsets = [23, 0], sizes = [1, 32], strides = [1, 1]} : vector<31x32xf32> to vector<1x32xf32>
    %170 = vector.broadcast %169 : vector<1x32xf32> to vector<16x32xf32>
    %171 = arith.mulf %168, %170 : vector<16x32xf32>
    %172 = arith.addf %167, %171 : vector<16x32xf32>
    %c25 = arith.constant 25 : index
    %c0_49 = arith.constant 0 : index
    %173 = vector.load %arg12[%c25, %c0_49] : memref<48x32xf32, #tpu.memory_space<vmem>>, vector<16x32xf32>
    %174 = vector.extract_strided_slice %55 {offsets = [24, 0], sizes = [1, 32], strides = [1, 1]} : vector<31x32xf32> to vector<1x32xf32>
    %175 = vector.broadcast %174 : vector<1x32xf32> to vector<16x32xf32>
    %176 = arith.mulf %173, %175 : vector<16x32xf32>
    %c26 = arith.constant 26 : index
    %c0_50 = arith.constant 0 : index
    %177 = vector.load %arg12[%c26, %c0_50] : memref<48x32xf32, #tpu.memory_space<vmem>>, vector<16x32xf32>
    %178 = vector.extract_strided_slice %55 {offsets = [25, 0], sizes = [1, 32], strides = [1, 1]} : vector<31x32xf32> to vector<1x32xf32>
    %179 = vector.broadcast %178 : vector<1x32xf32> to vector<16x32xf32>
    %180 = arith.mulf %177, %179 : vector<16x32xf32>
    %181 = arith.addf %176, %180 : vector<16x32xf32>
    %c27 = arith.constant 27 : index
    %c0_51 = arith.constant 0 : index
    %182 = vector.load %arg12[%c27, %c0_51] : memref<48x32xf32, #tpu.memory_space<vmem>>, vector<16x32xf32>
    %183 = vector.extract_strided_slice %55 {offsets = [26, 0], sizes = [1, 32], strides = [1, 1]} : vector<31x32xf32> to vector<1x32xf32>
    %184 = vector.broadcast %183 : vector<1x32xf32> to vector<16x32xf32>
    %185 = arith.mulf %182, %184 : vector<16x32xf32>
    %186 = arith.addf %181, %185 : vector<16x32xf32>
    %c28 = arith.constant 28 : index
    %c0_52 = arith.constant 0 : index
    %187 = vector.load %arg12[%c28, %c0_52] : memref<48x32xf32, #tpu.memory_space<vmem>>, vector<16x32xf32>
    %188 = vector.extract_strided_slice %55 {offsets = [27, 0], sizes = [1, 32], strides = [1, 1]} : vector<31x32xf32> to vector<1x32xf32>
    %189 = vector.broadcast %188 : vector<1x32xf32> to vector<16x32xf32>
    %190 = arith.mulf %187, %189 : vector<16x32xf32>
    %191 = arith.addf %186, %190 : vector<16x32xf32>
    %c29 = arith.constant 29 : index
    %c0_53 = arith.constant 0 : index
    %192 = vector.load %arg12[%c29, %c0_53] : memref<48x32xf32, #tpu.memory_space<vmem>>, vector<16x32xf32>
    %193 = vector.extract_strided_slice %55 {offsets = [28, 0], sizes = [1, 32], strides = [1, 1]} : vector<31x32xf32> to vector<1x32xf32>
    %194 = vector.broadcast %193 : vector<1x32xf32> to vector<16x32xf32>
    %195 = arith.mulf %192, %194 : vector<16x32xf32>
    %196 = arith.addf %191, %195 : vector<16x32xf32>
    %c30 = arith.constant 30 : index
    %c0_54 = arith.constant 0 : index
    %197 = vector.load %arg12[%c30, %c0_54] : memref<48x32xf32, #tpu.memory_space<vmem>>, vector<16x32xf32>
    %198 = vector.extract_strided_slice %55 {offsets = [29, 0], sizes = [1, 32], strides = [1, 1]} : vector<31x32xf32> to vector<1x32xf32>
    %199 = vector.broadcast %198 : vector<1x32xf32> to vector<16x32xf32>
    %200 = arith.mulf %197, %199 : vector<16x32xf32>
    %201 = arith.addf %196, %200 : vector<16x32xf32>
    %c31 = arith.constant 31 : index
    %c0_55 = arith.constant 0 : index
    %202 = vector.load %arg12[%c31, %c0_55] : memref<48x32xf32, #tpu.memory_space<vmem>>, vector<16x32xf32>
    %203 = vector.extract_strided_slice %55 {offsets = [30, 0], sizes = [1, 32], strides = [1, 1]} : vector<31x32xf32> to vector<1x32xf32>
    %204 = vector.broadcast %203 : vector<1x32xf32> to vector<16x32xf32>
    %205 = arith.mulf %202, %204 : vector<16x32xf32>
    %206 = arith.addf %201, %205 : vector<16x32xf32>
    %207 = arith.addf %94, %133 : vector<16x32xf32>
    %208 = arith.addf %172, %206 : vector<16x32xf32>
    %209 = arith.addf %207, %208 : vector<16x32xf32>
    %c0_56 = arith.constant 0 : index
    %c0_57 = arith.constant 0 : index
    %210 = vector.load %arg8[%c0_56, %c0_57] : memref<1x32xf32, #tpu.memory_space<vmem>>, vector<1x32xf32>
    %211 = vector.broadcast %210 : vector<1x32xf32> to vector<16x32xf32>
    %212 = arith.addf %209, %211 : vector<16x32xf32>
    %213 = tpu.iota {dimensions = array<i32: 0>} : vector<16x1xi32>
    %214 = vector.broadcast %0 : i32 to vector<16x1xi32>
    %215 = arith.addi %214, %213 : vector<16x1xi32>
    %216 = vector.broadcast %2 : i32 to vector<16x1xi32>
    %217 = arith.cmpi slt, %215, %216 : vector<16x1xi32>
    %cst_58 = arith.constant 0.000000e+00 : f32
    %218 = vector.shape_cast %217 : vector<16x1xi1> to vector<16x1xi1>
    %219 = vector.broadcast %218 : vector<16x1xi1> to vector<16x32xi1>
    %220 = vector.broadcast %cst_58 : f32 to vector<16x32xf32>
    %221 = arith.select %219, %212, %220 : vector<16x32xi1>, vector<16x32xf32>
    %222 = arith.truncf %221 : vector<16x32xf32> to vector<16x32xbf16>
    %c0_59 = arith.constant 0 : index
    %c0_60 = arith.constant 0 : index
    %c0_61 = arith.constant 0 : index
    %223 = vector.load %arg9[%c0_59, %c0_60, %c0_61] : memref<1x16x32xbf16, #tpu.memory_space<vmem>>, vector<1x16x32xbf16>
    %224 = vector.shape_cast %223 : vector<1x16x32xbf16> to vector<16x32xbf16>
    %225 = vector.shape_cast %222 : vector<16x32xbf16> to vector<1x16x32xbf16>
    tpu.vector_store %arg9[%c0_59, %c0_60, %c0_61], %225 {strides = array<i32>} : memref<1x16x32xbf16, #tpu.memory_space<vmem>>, vector<1x16x32xbf16>,
    %c0_i32_62 = arith.constant 0 : i32
    %226 = arith.cmpi eq, %arg1, %c0_i32_62 : i32
    %227 = arith.extui %226 : i1 to i32
    %c0_i32_63 = arith.constant 0 : i32
    %228 = arith.cmpi ne, %227, %c0_i32_63 : i32
    scf.if %228 {
      %cst_78 = arith.constant 0.000000e+00 : f32
      %246 = vector.broadcast %cst_78 : f32 to vector<1x1x32xf32>
      %c0_79 = arith.constant 0 : index
      %c0_80 = arith.constant 0 : index
      %c0_81 = arith.constant 0 : index
      %247 = vector.load %arg10[%c0_79, %c0_80, %c0_81] : memref<1x1x32xf32, #tpu.memory_space<vmem>>, vector<1x1x32xf32>
      tpu.vector_store %arg10[%c0_79, %c0_80, %c0_81], %246 {strides = array<i32>} : memref<1x1x32xf32, #tpu.memory_space<vmem>>, vector<1x1x32xf32>,
      %cst_82 = arith.constant 0.000000e+00 : f32
      %248 = vector.broadcast %cst_82 : f32 to vector<1x1x32xf32>
      %c0_83 = arith.constant 0 : index
      %c0_84 = arith.constant 0 : index
      %c0_85 = arith.constant 0 : index
      %249 = vector.load %arg11[%c0_83, %c0_84, %c0_85] : memref<1x1x32xf32, #tpu.memory_space<vmem>>, vector<1x1x32xf32>
      tpu.vector_store %arg11[%c0_83, %c0_84, %c0_85], %248 {strides = array<i32>} : memref<1x1x32xf32, #tpu.memory_space<vmem>>, vector<1x1x32xf32>,
    } else {
    }
    %c0_64 = arith.constant 0 : index
    %c0_65 = arith.constant 0 : index
    %c0_66 = arith.constant 0 : index
    %229 = vector.load %arg10[%c0_64, %c0_65, %c0_66] : memref<1x1x32xf32, #tpu.memory_space<vmem>>, vector<1x1x32xf32>
    %230 = vector.shape_cast %229 : vector<1x1x32xf32> to vector<1x32xf32>
    %cst_67 = arith.constant dense<0.000000e+00> : vector<32xf32>
    %231 = vector.multi_reduction <add>, %221, %cst_67 [0] : vector<16x32xf32> to vector<32xf32>
    %232 = vector.shape_cast %231 : vector<32xf32> to vector<1x32xf32>
    %233 = arith.addf %230, %232 : vector<1x32xf32>
    %c0_68 = arith.constant 0 : index
    %c0_69 = arith.constant 0 : index
    %c0_70 = arith.constant 0 : index
    %234 = vector.load %arg10[%c0_68, %c0_69, %c0_70] : memref<1x1x32xf32, #tpu.memory_space<vmem>>, vector<1x1x32xf32>
    %235 = vector.shape_cast %234 : vector<1x1x32xf32> to vector<1x32xf32>
    %236 = vector.shape_cast %233 : vector<1x32xf32> to vector<1x1x32xf32>
    tpu.vector_store %arg10[%c0_68, %c0_69, %c0_70], %236 {strides = array<i32>} : memref<1x1x32xf32, #tpu.memory_space<vmem>>, vector<1x1x32xf32>,
    %c0_71 = arith.constant 0 : index
    %c0_72 = arith.constant 0 : index
    %c0_73 = arith.constant 0 : index
    %237 = vector.load %arg11[%c0_71, %c0_72, %c0_73] : memref<1x1x32xf32, #tpu.memory_space<vmem>>, vector<1x1x32xf32>
    %238 = vector.shape_cast %237 : vector<1x1x32xf32> to vector<1x32xf32>
    %239 = arith.mulf %221, %221 : vector<16x32xf32>
    %cst_74 = arith.constant dense<0.000000e+00> : vector<32xf32>
    %240 = vector.multi_reduction <add>, %239, %cst_74 [0] : vector<16x32xf32> to vector<32xf32>
    %241 = vector.shape_cast %240 : vector<32xf32> to vector<1x32xf32>
    %242 = arith.addf %238, %241 : vector<1x32xf32>
    %c0_75 = arith.constant 0 : index
    %c0_76 = arith.constant 0 : index
    %c0_77 = arith.constant 0 : index
    %243 = vector.load %arg11[%c0_75, %c0_76, %c0_77] : memref<1x1x32xf32, #tpu.memory_space<vmem>>, vector<1x1x32xf32>
    %244 = vector.shape_cast %243 : vector<1x1x32xf32> to vector<1x32xf32>
    %245 = vector.shape_cast %242 : vector<1x32xf32> to vector<1x1x32xf32>
    tpu.vector_store %arg11[%c0_75, %c0_76, %c0_77], %245 {strides = array<i32>} : memref<1x1x32xf32, #tpu.memory_space<vmem>>, vector<1x1x32xf32>,
    return
  }
  func.func @transform_0(%arg0: i32, %arg1: i32, %arg2: memref<2xi32, #tpu.memory_space<smem>>) -> (i32, i32, i32) {
    %c0_i32 = arith.constant 0 : i32
    %c0_i32_0 = arith.constant 0 : i32
    return %arg0, %arg1, %c0_i32 : i32, i32, i32
  }
  func.func @transform_1(%arg0: i32, %arg1: i32, %arg2: memref<2xi32, #tpu.memory_space<smem>>) -> (i32, i32, i32) {
    %c1_i32 = arith.constant 1 : i32
    %0 = arith.addi %arg1, %c1_i32 : i32
    %c1_i32_0 = arith.constant 1 : i32
    %1 = arith.muli %0, %c1_i32_0 : i32
    %c2_i32 = arith.constant 2 : i32
    %2 = arith.minsi %1, %c2_i32 : i32
    %c0_i32 = arith.constant 0 : i32
    %c0_i32_1 = arith.constant 0 : i32
    return %arg0, %2, %c0_i32 : i32, i32, i32
  }
  func.func @transform_2(%arg0: i32, %arg1: i32, %arg2: memref<2xi32, #tpu.memory_space<smem>>) -> (i32, i32) {
    %c0_i32 = arith.constant 0 : i32
    %c0_i32_0 = arith.constant 0 : i32
    %c0_i32_1 = arith.constant 0 : i32
    return %c0_i32, %c0_i32_0 : i32, i32
  }
  func.func @transform_3(%arg0: i32, %arg1: i32, %arg2: memref<2xi32, #tpu.memory_space<smem>>) -> (i32, i32) {
    %c0_i32 = arith.constant 0 : i32
    %c0_i32_0 = arith.constant 0 : i32
    %c0_i32_1 = arith.constant 0 : i32
    return %c0_i32, %c0_i32_0 : i32, i32
  }
  func.func @transform_4(%arg0: i32, %arg1: i32, %arg2: memref<2xi32, #tpu.memory_space<smem>>) -> (i32, i32) {
    %c0_i32 = arith.constant 0 : i32
    %c0_i32_0 = arith.constant 0 : i32
    %c0_i32_1 = arith.constant 0 : i32
    return %c0_i32, %c0_i32_0 : i32, i32
  }
  func.func @transform_5(%arg0: i32, %arg1: i32, %arg2: memref<2xi32, #tpu.memory_space<smem>>) -> (i32, i32) {
    %c0_i32 = arith.constant 0 : i32
    %c0_i32_0 = arith.constant 0 : i32
    %c0_i32_1 = arith.constant 0 : i32
    return %c0_i32, %c0_i32_0 : i32, i32
  }
  func.func @transform_6(%arg0: i32, %arg1: i32, %arg2: memref<2xi32, #tpu.memory_space<smem>>) -> (i32, i32, i32) {
    %c0_i32 = arith.constant 0 : i32
    %c0_i32_0 = arith.constant 0 : i32
    return %arg0, %arg1, %c0_i32 : i32, i32, i32
  }
  func.func @transform_7(%arg0: i32, %arg1: i32, %arg2: memref<2xi32, #tpu.memory_space<smem>>) -> (i32, i32, i32) {
    %c0_i32 = arith.constant 0 : i32
    %c0_i32_0 = arith.constant 0 : i32
    %c0_i32_1 = arith.constant 0 : i32
    return %arg0, %c0_i32, %c0_i32_0 : i32, i32, i32
  }
  func.func @transform_8(%arg0: i32, %arg1: i32, %arg2: memref<2xi32, #tpu.memory_space<smem>>) -> (i32, i32, i32) {
    %c0_i32 = arith.constant 0 : i32
    %c0_i32_0 = arith.constant 0 : i32
    %c0_i32_1 = arith.constant 0 : i32
    return %arg0, %c0_i32, %c0_i32_0 : i32, i32, i32
  }
}

</mosaic_0001>

<bundles_post_ra>
// kernel: squeeze.2
= control target key start
LH: loop header
LB: loop body
LE: loop exit
PB: predicated region body
PF: predicated region fallthrough
CT: control target
= control target key end

     0   :  { %s66_s8 = smov 116   ;;  %vm7_vm0 = vcmask 31744   ;;  %s67_s11 = smov 120   ;;  %s117_s0 = inlined_call_operand.vmem [shape: f32[2,32], index: 0, kind: input, shape index: {}]   ;;  %s118_s1 = inlined_call_operand.vmem [shape: f32[2,8,4], index: 1, kind: output, shape index: {}]  }
   0x1   :  { %v4_v0 = vld [vmem:[%s117_s0] sm:$0x3]  ;;  %s65_s0 = smov 124   ;;  %s68_s12 = smov 112  }
   0x2   :  { %5 = vst [vmem:[#allocation0] sm:$0x3] %v4_v0  ;;  %s69_s13 = smov 108   ;;  %s70_s14 = smov 104  }
   0x3   :  { %s71_s15 = smov 100  }
   0x9   :  { %v9_v1 = vld [vmem:[#allocation0] sm:$0x3]  }
   0xa   :  { %v21_v2 = vld [vmem:[#allocation0] sm:$0x3]   ;;  %10 = vrot.lane.b32.xlu0 %v9_v1, %s65_s0 }
   0xb   :  { %22 = vrot.lane.b32.xlu1 %v21_v2, %s66_s8  ;;  %v15_v3 = vld [vmem:[#allocation0] sm:$0x3]  }
   0xc   :  { %v27_v4 = vld [vmem:[#allocation0] sm:$0x3]  }
   0xd   :  { %v6_v5 = vld [vmem:[#allocation0] sm:$0x3]  }
   0xe   :  { %8 = vst.msk [vmem:[%s118_s1] ss:$8 sm:$0x3] %vm7_vm0, %v6_v5   ;;  %16 = vrot.lane.b32.xlu0 %v15_v3, %s67_s11  ;;  %v33_v6 = vld [vmem:[#allocation0] sm:$0x3]  }
   0xf   :  { %28 = vrot.lane.b32.xlu1 %v27_v4, %s68_s12  ;;  %v39_v7 = vld [vmem:[#allocation0] sm:$0x3]  }
  0x10   :  { %v45_v8 = vld [vmem:[#allocation0] sm:$0x3]  }
  0x12   :  { %34 = vrot.lane.b32.xlu0 %v33_v6, %s69_s13 }
  0x13   :  { %40 = vrot.lane.b32.xlu1 %v39_v7, %s70_s14 }
  0x16   :  { %46 = vrot.lane.b32.xlu0 %v45_v8, %s71_s15 }
  0x7c   :  { %v11_v9 = vpop.permute.xlu0 %10  }
  0x7d   :  { %v23_v10 = vpop.permute.xlu1 %22   ;;  %51 = vst.msk [vmem:[%s118_s1 + $0x1] ss:$8 sm:$0x3] %vm7_vm0, %v11_v9  }
  0x7e   :  { %53 = vst.msk [vmem:[%s118_s1 + $0x3] ss:$8 sm:$0x3] %vm7_vm0, %v23_v10  }
  0x80   :  { %v17_v11 = vpop.permute.xlu0 %16  }
  0x81   :  { %v29_v12 = vpop.permute.xlu1 %28   ;;  %52 = vst.msk [vmem:[%s118_s1 + $0x2] ss:$8 sm:$0x3] %vm7_vm0, %v17_v11  }
  0x82   :  { %54 = vst.msk [vmem:[%s118_s1 + $0x4] ss:$8 sm:$0x3] %vm7_vm0, %v29_v12  }
  0x84   :  { %v35_v13 = vpop.permute.xlu0 %34  }
  0x85   :  { %v41_v14 = vpop.permute.xlu1 %40   ;;  %55 = vst.msk [vmem:[%s118_s1 + $0x5] ss:$8 sm:$0x3] %vm7_vm0, %v35_v13  }
  0x86   :  { %56 = vst.msk [vmem:[%s118_s1 + $0x6] ss:$8 sm:$0x3] %vm7_vm0, %v41_v14  }
  0x88   :  { %v47_v15 = vpop.permute.xlu0 %46  }
  0x89   :  { %57 = vst.msk [vmem:[%s118_s1 + $0x7] ss:$8 sm:$0x3] %vm7_vm0, %v47_v15  }

// kernel: conv_module_forward.3
= control target key start
LH: loop header
LB: loop body
LE: loop exit
PB: predicated region body
PF: predicated region fallthrough
CT: control target
= control target key end

     0   :  { %s759_s21 = smov 0   ;;  %s761_s22 = smov 0   ;;  %s835_s0 = inlined_call_operand.vmem [shape: f32[2,48,32], index: 0, kind: input, shape index: {}]   ;;  %s836_s1 = inlined_call_operand.vmem [shape: bf16[2,48,32], index: 1, kind: input, shape index: {}]   ;;  %s837_s2 = inlined_call_operand.vmem [shape: f32[2,1,32], index: 2, kind: input, shape index: {}]   ;;  %s838_s3 = inlined_call_operand.vmem [shape: f32[2,1,32], index: 3, kind: input, shape index: {}]   ;;  %s839_s4 = inlined_call_operand.vmem [shape: bf16[32,32], index: 4, kind: input, shape index: {}]   ;;  %s840_s5 = inlined_call_operand.vmem [shape: f32[1,32], index: 5, kind: input, shape index: {}]   ;;  %s841_s6 = inlined_call_operand.vmem [shape: f32[2,48,32], index: 6, kind: output, shape index: {}]  }
   0x1   :  { %s763_s23 = smov 0   ;;  %s765_s24 = smov 0  }
   0x2   :  { %s767_s25 = smov 0  }
   0x3 LB: > { %s25_s26 = sadd.s32 1, %s712_s23  ;;  %s28_s27 = sadd.s32 1, %s716_s24  ;;  %s720_s25 = sphi %s767_s25, %s16_s25   ;;  %s716_s24 = sphi %s765_s24, %s845_s24   ;;  %s712_s23 = sphi %s763_s23, %s844_s23   ;;  %s708_s22 = sphi %s761_s22, %s843_s22   ;;  %s704_s21 = sphi %s759_s21, %s842_s21  }
   0x4   : > { %p26_p0 = scmp.ge.s32.totalorder %s25_s26, 3  ;;  %p597_p1 = scmp.ge.s32.totalorder %s720_s25, 1 }
   0x5   : > { %p266_p2 = scmp.lt.s32.totalorder %s720_s25, 7 }
   0x6   : > { %s847_s26 = smov (%p26_p0, %s25_s26), 0  ;;  %s849_s27 = smov (!%p26_p0, %s28_s27), %s716_s24 }
   0x7   : > { %p267_p3 = pnand %p597_p1, %p266_p2  ;;  %p30_p4 = scmp.ge.s32.totalorder %s849_s27, 2 }
   0x8   : > { %v672_v0 = vld [vmem:[%s839_s4] sm:$0xff] (!%p267_p3)   ;;  %v722_v1 = vmov (!%p267_p3), 0.0   ;;  %v673_v2 = vld [vmem:[%s839_s4 + $0x8] sm:$0xff] (!%p267_p3)   ;;  %vm723_vm0 = vmmov (!%p267_p3), 0   ;;  %s598_s8 = sshll.u32 (!%p267_p3), %s704_s21, 1  ;;  %p320_p5 = scmp.lt.s32.totalorder (!%p267_p3), %s708_s22, 1 }
   0x9   : > { %s851_s27 = smov (%p30_p4, %s849_s27), 0  ;;  %270 = sbr.rel (%p267_p3) target bundleno = 279 (0x117), region = 44 }
   0xa   : > { %621 = vmatprep.subr.bf16.mxu0 (!%p267_p3), %v722_v1  ;;  %625 = vmatprep.mubr.msk.bf16.mxu0 (!%p267_p3), %vm723_vm0, %v722_v1  ;;  %p322_p6 = scmp.lt.s32.totalorder (!%p267_p3), %s598_s8, 5  ;;  %vm418_vm1 = vcmask (!%p267_p3), 261120   ;;  %v608_v23 = vld [vmem:[%s840_s5] ss:$0 sm:$0xff] (!%p267_p3) }
   0xb   : > { %622 = vmatpush3.bf16.msra.mxu0 (!%p267_p3), %v672_v0 }
   0xc   : > { %623 = vmatprep.subr.bf16.mxu0 (!%p267_p3), %v722_v1 }
   0xf   : > { %624 = vmatpush3.bf16.msra.mxu0 (!%p267_p3), %v673_v2 }
  0x10   : > { %s853_s22 = smov (!%p320_p5, %s708_s22), 1  ;;  %s855_s8 = smov (!%p322_p6, %s598_s8), 5 }
  0x11   : > { %s629_s9 = smul.u32 6, %s853_s22  ;;  %s341_s13 = scalar_lea.vmem %s837_s2, %s853_s22 }
  0x12   : > { %s344_s20 = scalar_lea.vmem %s838_s3, %s853_s22  ;;  %v604_v4 = vld [vmem:[%s341_s13] ss:$0 sm:$0xff] }
  0x13   : > { %s795_s10 = sadd.s32 %s629_s9, %s855_s8  ;;  %v605_v7 = vld [vmem:[%s344_s20] ss:$0 sm:$0xff] }
  0x14   : > { %s601_s14 = sshll.u32 %s795_s10, 2  ;;  %s599_s21 = sshll.u32 %s795_s10, 3 }
  0x15   : > { %s337_s17 = scalar_lea.vmem %s836_s1, %s601_s14  ;;  %s327_s29 = scalar_lea.vmem %s835_s0, %s599_s21 }
  0x16   : > { %v615_v3 = vld [vmem:[%s337_s17] sm:$0xff]   ;;  %s353_s11 = scalar_lea.vmem %s841_s6, %s599_s21  ;;  %v357_v28 = vld [vmem:[%s327_s29 + $0x8] sm:$0xff] }
  0x17   : > { %v616_v5 = vunpack.c.l.bf16 %v615_v3  ;;  %v617_v6 = vunpack.c.h.bf16 %v615_v3  ;;  %v356_v24 = vld [vmem:[%s327_s29] sm:$0xff] }
  0x19   : > { %v369_v8 = vmul.f32 %v616_v5, %v604_v4  ;;  %v370_v9 = vmul.f32 %v617_v6, %v604_v4 }
  0x1b   : > { %v378_v10 = vadd.f32 %v605_v7, %v369_v8  ;;  %v379_v11 = vadd.f32 %v605_v7, %v370_v9 }
  0x1d   : > { %v606_v12 = vmul.f32 -1.442695, %v378_v10  ;;  %v607_v13 = vmul.f32 -1.442695, %v379_v11 }
  0x1f   : > { %674 = vpow2.f32 %v606_v12 }
  0x20   : > { %676 = vpow2.f32 %v607_v13 }
  0x29   : > { %v675_v14 = vpop.eup %674 }
  0x2a   : > { %v677_v15 = vpop.eup %676  ;;  %v386_v16 = vadd.f32 1.0, %v675_v14 }
  0x2b   : > { %v387_v17 = vadd.f32 1.0, %v677_v15 }
  0x2c   : > { %678 = vrcp.f32 %v386_v16 }
  0x2d   : > { %680 = vrcp.f32 %v387_v17 }
  0x36   : > { %v679_v18 = vpop.eup %678 }
  0x37   : > { %v681_v19 = vpop.eup %680  ;;  %v392_v20 = vmul.f32 %v679_v18, %v378_v10 }
  0x38   : > { %v393_v21 = vmul.f32 %v681_v19, %v379_v11 }
  0x3a   : > { %v394_v22 = vpack.c.bf16 %v393_v21, %v392_v20 }
  0x3c   : > { %626 = vmatmul.mubr.msk.bf16.vlgmr.msra.gmra.mrb[0].mxu0 %vm418_vm1, %v394_v22 }
 0x10f   : > { %v456_v25 = vpop.f32.mrb[0].mxu0 }
 0x110   : > { %v457_v26 = vadd.f32 %v608_v23, %v456_v25  ;;  %v627_v27 = vpop.f32.mrb[1].mxu0 }
 0x111   : > { %v459_v29 = vpop.f32.mrb[2].mxu0 }
 0x112   : > { %v463_v30 = vadd.f32 %v457_v26, %v356_v24  ;;  %v460_v31 = vadd.f32 %v608_v23, %v459_v29  ;;  %v628_v32 = vpop.f32.mrb[3].mxu0 }
 0x114   : > { %465 = vst.msk [vmem:[%s353_s11] sm:$0xff] %vm418_vm1, %v463_v30  ;;  %v464_v33 = vadd.f32 %v460_v31, %v357_v28 }
 0x116   : > { %466 = vst.msk [vmem:[%s353_s11 + $0x8] sm:$0xff] %vm418_vm1, %v464_v33 }
 0x117 PF: > { %s16_s25 = sadd.s32 1, %s720_s25   ;;  %s842_s21 = smov %s712_s23 }
 0x118   : > { %p13_p7 = scmp.ge.s32.totalorder %s16_s25, 8   ;;  %s843_s22 = smov %s716_s24 }
 0x119   : > { %s844_s23 = smov %s847_s26  ;;  %s845_s24 = smov %s851_s27 }
 0x11a   :  { %15 = sbr.rel (!%p13_p7) target bundleno = 3 (0x3), region = 83 }

// kernel: conv_module_forward.2
= control target key start
LH: loop header
LB: loop body
LE: loop exit
PB: predicated region body
PF: predicated region fallthrough
CT: control target
= control target key end

     0   :  { %s1701_s0 = inlined_call_operand.vmem [shape: s32[2], index: 0, kind: input, shape index: {}]   ;;  %s1702_s1 = inlined_call_operand.vmem [shape: f32[2,48,32], index: 1, kind: input, shape index: {}, may-alias: {1,2}]   ;;  %s1703_s2 = inlined_call_operand.vmem [shape: f32[2,48,32], index: 2, kind: input, shape index: {}, may-alias: {1,2}]   ;;  %s1704_s3 = inlined_call_operand.vmem [shape: bf16[32,32], index: 3, kind: input, shape index: {}]   ;;  %s1705_s4 = inlined_call_operand.vmem [shape: f32[1,32], index: 4, kind: input, shape index: {}]   ;;  %s1706_s5 = inlined_call_operand.vmem [shape: f32[31,32], index: 5, kind: input, shape index: {}]   ;;  %s1707_s6 = inlined_call_operand.vmem [shape: f32[1,32], index: 6, kind: input, shape index: {}]   ;;  %s1708_s7 = inlined_call_operand.vmem [shape: bf16[2,48,32], index: 7, kind: output, shape index: {0}]   ;;  %s1709_s8 = inlined_call_operand.vmem [shape: f32[2,1,32], index: 8, kind: output, shape index: {1}]   ;;  %s1710_s9 = inlined_call_operand.vmem [shape: f32[2,1,32], index: 9, kind: output, shape index: {2}]  }
   0x1   :  { %s15_s11 = sshll.u32 %s1701_s0, 4  ;;  %s16_s11 = int_to_ptr.vmem [resolvable:$true] %s15_s11 }
   0x2   :  { %s1239_s12 = scalar_lea.vmem %s16_s11, 16  ;;  %p1244_p1 = scmp.lt.s32.totalorder %s16_s11, %s16_s11 }
   0x3   :  { %p1240_p0 = scmp.ne.s32.totalorder %s16_s11, %s1239_s12  ;;  %p1245_p2 = scmp.lt.s32.totalorder %s1239_s12, %s1239_s12 }
   0x5   :  { %p1246_p3 = por %p1245_p2, %p1244_p1 }
   0x7   :  { %p1247_p4 = pnand %p1246_p3, %p1240_p0 }
   0x9   :  { %1250 = shalt.err (!%p1247_p4)  }
   0xa   :  { %s1293_s13 = smov [#allocation4]  }
   0xb   :  { %18 = dma.vmem_to_smem %s16_s11, 16, %s1293_s13, [#allocation3] }
   0xc   :  { %1271 = dma.done.wait [#allocation3], 16 }
   0xd   :  { %1272 = vsyncadd [#allocation3], 4294967280 }
   0xe   :  { %20 = sfence }
   0xf   :  { %s1350_s14 = smov 0   ;;  %s1352_s15 = smov 0  }
  0x10   :  { %s1354_s16 = smov 0   ;;  %s1356_s0 = smov 0  }
  0x11   :  { %s1358_s17 = smov 0  }
  0x12 LB: > { %s35_s18 = sadd.s32 1, %s1283_s16  ;;  %s38_s19 = sadd.s32 1, %s1287_s0  ;;  %s1291_s17 = sphi %s1358_s17, %s26_s17   ;;  %s1287_s0 = sphi %s1356_s0, %s1714_s0   ;;  %s1283_s16 = sphi %s1354_s16, %s1713_s16   ;;  %s1279_s15 = sphi %s1352_s15, %s1712_s15   ;;  %s1275_s14 = sphi %s1350_s14, %s1711_s14  }
  0x13   : > { %p36_p5 = scmp.ge.s32.totalorder %s35_s18, 3  ;;  %p1123_p6 = scmp.ge.s32.totalorder %s1291_s17, 1 }
  0x14   : > { %p324_p7 = scmp.lt.s32.totalorder %s1291_s17, 7 }
  0x15   : > { %s1716_s18 = smov (%p36_p5, %s35_s18), 0  ;;  %s1718_s19 = smov (!%p36_p5, %s38_s19), %s1287_s0 }
  0x16   : > { %p325_p8 = pnand %p1123_p6, %p324_p7  ;;  %p40_p9 = scmp.ge.s32.totalorder %s1718_s19, 2 }
  0x17   : > { %v1215_v0 = vld [vmem:[%s1704_s3] sm:$0xff] (!%p325_p8)   ;;  %v1294_v1 = vmov (!%p325_p8), 0.0   ;;  %v1216_v2 = vld [vmem:[%s1704_s3 + $0x8] sm:$0xff] (!%p325_p8)   ;;  %s1124_s24 = sshll.u32 (!%p325_p8), %s1275_s14, 1  ;;  %p385_p10 = scmp.lt.s32.totalorder (!%p325_p8), %s1279_s15, 1  ;;  %vm1295_vm0 = vmmov (!%p325_p8), 0   ;;  %v514_v23 = vlaneseq (!%p325_p8) }
  0x18   : > { %s1720_s19 = smov (%p40_p9, %s1718_s19), 0  ;;  %328 = sbr.rel (%p325_p8) target bundleno = 355 (0x163), region = 44 }
  0x19   : > { %1154 = vmatprep.subr.bf16.mxu0 (!%p325_p8), %v1294_v1  ;;  %1162 = vmatprep.subr.bf16.mxu1 (!%p325_p8), %v1294_v1  ;;  %p387_p11 = scmp.lt.s32.totalorder (!%p325_p8), %s1124_s24, 5  ;;  %s394_s25 = sadd.s32 (!%p325_p8), 1, %s1275_s14  ;;  %vm455_vm1 = vcmask (!%p325_p8), 261120   ;;  %v1131_v11 = vld [vmem:[%s1705_s4] ss:$0 sm:$0xff] (!%p325_p8)  ;;  %v1426_v30 = vshrl.u32 (!%p325_p8), %v514_v23, 7 }
  0x1a   : > { %1155 = vmatpush3.bf16.msra.mxu0 (!%p325_p8), %v1215_v0  ;;  %1163 = vmatpush3.bf16.msra.mxu1 (!%p325_p8), %v1215_v0  ;;  %p395_p12 = scmp.lt.s32.totalorder (!%p325_p8), %s394_s25, 2  ;;  %p604_p0 = scmp.gt.s32.totalorder (!%p325_p8), %s1275_s14, 0  ;;  %v1440_v36 = vld [vmem:[%s1706_s5] sm:$0xff] (!%p325_p8)  ;;  %vm924_vm6 = vcmask (!%p325_p8), 257024  }
  0x1b   : > { %1156 = vmatprep.subr.bf16.mxu0 (!%p325_p8), %v1294_v1  ;;  %1158 = vmatprep.mubr.msk.bf16.mxu0 (!%p325_p8), %vm1295_vm0, %v1294_v1  ;;  %s428_s21 = sld [smem:[#allocation4 + %s1279_s15]] (!%p325_p8)  ;;  %s1130_s22 = sshll.u32 (!%p325_p8), %s1275_s14, 4  ;;  %v1432_v34 = vsub.s32 (!%p325_p8), 0, %v1426_v30  ;;  %v1435_v35 = vsub.s32 (!%p325_p8), 1, %v1426_v30  ;;  %v1445_v38 = vadd.s32 (!%p325_p8), 8, %v1426_v30  ;;  %v1455_v44 = vsub.s32 (!%p325_p8), 2, %v1426_v30 }
  0x1c   : > { %1164 = vmatprep.subr.bf16.mxu1 (!%p325_p8), %v1294_v1  ;;  %1166 = vmatprep.mubr.msk.bf16.mxu1 (!%p325_p8), %vm1295_vm0, %v1294_v1  ;;  %v517_v37 = vstv (!%p325_p8), %s1130_s22  ;;  %v1469_v53 = vsub.s32 (!%p325_p8), 3, %v1426_v30  ;;  %v1483_v0 = vsub.s32 (!%p325_p8), 4, %v1426_v30  ;;  %p1143_p1 = scmp.ne.s32.totalorder (!%p325_p8), %s1275_s14, 0 }
  0x1d   : > { %v625_v39 = vrot.slane (!%p325_p8), %v1440_v36, %v1432_v34  ;;  %v633_v40 = vrot.slane (!%p325_p8), %v1440_v36, %v1435_v35  ;;  %v1452_v43 = vadd.s32 (!%p325_p8), %v517_v37, %v1426_v30  ;;  %v1460_v46 = vadd.s32 (!%p325_p8), %v517_v37, %v1445_v38 }
  0x1e   : > { %1157 = vmatpush3.bf16.msra.mxu0 (!%p325_p8), %v1216_v2  ;;  %1165 = vmatpush3.bf16.msra.mxu1 (!%p325_p8), %v1216_v2  ;;  %v1466_v52 = vrot.slane (!%p325_p8), %v1440_v36, %v1455_v44  ;;  %v1480_v63 = vrot.slane (!%p325_p8), %v1440_v36, %v1469_v53 }
  0x1f   : > { %s386_s26 = scalar_select %p385_p10, %s1279_s15, 1 }
  0x20   : > { %s1722_s24 = smov (!%p387_p11, %s1124_s24), 5  ;;  %s1724_s25 = smov (!%p395_p12, %s394_s25), 2 }
  0x21   : > { %s1170_s27 = smul.u32 6, %s386_s26  ;;  %s1397_s30 = scalar_lea.vmem %s1709_s8, %s386_s26  ;;  %v1457_v45 = vstv %s428_s21  ;;  %vm931_vm7 = vcmask (!%p1143_p1), 253952  }
  0x22   : > { %s1402_s12 = scalar_lea.vmem %s1710_s9, %s386_s26  ;;  %s1126_s28 = sshll.u32 %s1724_s25, 1  ;;  %vm521_vm2 = vcmp.lt.s32.totalorder %v1452_v43, %v1457_v45  ;;  %vm522_vm3 = vcmp.lt.s32.totalorder %v1460_v46, %v1457_v45 }
  0x23   : > { %s1404_s13 = sadd.s32 %s1170_s27, %s1722_s24  ;;  %p400_p13 = scmp.lt.s32.totalorder %s1126_s28, 5 }
  0x24   : > { %s1125_s20 = sshll.u32 %s1404_s13, 3  ;;  %s1487_s15 = sadd.s32 16, %s1130_s22 }
  0x25   : > { %s392_s23 = scalar_lea.vmem %s1702_s1, %s1125_s20  ;;  %s1726_s28 = smov (!%p400_p13, %s1126_s28), 5 }
  0x26   : > { %v434_v3 = vld [vmem:[%s392_s23] sm:$0xff]  ;;  %v435_v4 = vld [vmem:[%s392_s23 + $0x8] sm:$0xff]  ;;  %s403_s26 = sadd.s32 %s1170_s27, %s1726_s28  ;;  %s1129_s21 = sshll.u32 %s1404_s13, 2 }
  0x27   : > { %v436_v5 = vpack.c.bf16 %v435_v4, %v434_v3  ;;  %s1127_s24 = sshll.u32 %s403_s26, 3  ;;  %s418_s28 = scalar_lea.vmem %s1708_s7, %s1129_s21 }
  0x28   : > { %s405_s11 = scalar_lea.vmem %s1703_s2, %s1127_s24 }
  0x29   : > { %1159 = vmatmul.mubr.msk.bf16.vlgmr.msra.gmra.mrb[0].mxu0 %vm455_vm1, %v436_v5  ;;  %v529_v6 = vld [vmem:[%s405_s11] sm:$0xff]  ;;  %v530_v7 = vld [vmem:[%s405_s11 + $0x8] sm:$0xff]  ;;  %s1218_s20 = scalar_select %p604_p0, 255, 0 }
  0x2a   : > { %v532_v8 = vpack.c.bf16 %v530_v7, %v529_v6  ;;  %v591_v6 = vstv %s1487_s15  ;;  %v617_v7 = vld [vmem:[%s1706_s5 + $0x8] sm:$0xff] }
  0x2b   : > { %v1219_v9 = vld [vmem:[#allocation2 + $0x10] sm:%s1218_s20]  ;;  %v1222_v10 = vld [vmem:[#allocation2 + $0x18] sm:%s1218_s20] }
  0x2c   : > { %1167 = vmatmul.mubr.msk.bf16.vlgmr.msra.gmra.mrb[0].mxu1 %vm455_vm1, %v532_v8  ;;  %610 = vst.msk [vmem:[#allocation2] sm:$0xff] %vm455_vm1, %v1219_v9  ;;  %611 = vst.msk [vmem:[#allocation2 + $0x8] sm:$0xff] %vm455_vm1, %v1222_v10  ;;  %v1500_v8 = vrot.slane %v1440_v36, %v1483_v0  ;;  %v1503_v9 = vsub.s32 5, %v1426_v30  ;;  %v1506_v10 = vsub.s32 7, %v1426_v30 }
  0x2e   : > { %v1526_v23 = vrot.slane %v1440_v36, %v1506_v10 }
  0x33   : > { %v620_v41 = vld [vmem:[#allocation2 + $0x1] sm:$0xff] }
  0x34   : > { %v628_v42 = vld [vmem:[#allocation2 + $0x2] sm:$0xff]  ;;  %v626_v47 = vmul.f32 %v625_v39, %v620_v41 }
  0x35   : > { %v634_v48 = vmul.f32 %v633_v40, %v628_v42  ;;  %v638_v50 = vld [vmem:[#allocation2 + $0x3] sm:$0xff] }
  0x36   : > { %v644_v57 = vmul.f32 %v1466_v52, %v638_v50  ;;  %v648_v62 = vld [vmem:[#allocation2 + $0x4] sm:$0xff] }
  0x37   : > { %v636_v56 = vadd.f32 %v634_v48, %v626_v47  ;;  %v654_v3 = vmul.f32 %v1480_v63, %v648_v62  ;;  %v658_v5 = vld [vmem:[#allocation2 + $0x5] sm:$0xff]  ;;  %v718_v48 = vrot.slane %v617_v7, %v1455_v44 }
  0x39   : > { %v646_v2 = vadd.f32 %v644_v57, %v636_v56  ;;  %v688_v57 = vld [vmem:[#allocation2 + $0x8] sm:$0xff] }
  0xfc   : > { %v493_v12 = vpop.f32.mrb[0].mxu0 }
  0xfd   : > { %v494_v13 = vadd.f32 %v1131_v11, %v493_v12  ;;  %v1160_v14 = vpop.f32.mrb[1].mxu0  ;;  %v664_v12 = vmul.f32 %v1500_v8, %v658_v5 }
  0xfe   : > { %v496_v15 = vpop.f32.mrb[2].mxu0  ;;  %v1513_v14 = vld [vmem:[%s1706_s5 + $0x10] sm:$0xff] }
  0xff   : > { %v1135_v16 = vmul.f32 -1.442695, %v494_v13  ;;  %v497_v17 = vadd.f32 %v1131_v11, %v496_v15  ;;  %v1161_v18 = vpop.f32.mrb[3].mxu0  ;;  %v570_v20 = vpop.f32.mrb[0].mxu1  ;;  %v668_v15 = vld [vmem:[#allocation2 + $0x6] sm:$0xff]  ;;  %v1545_v50 = vrot.slane %v1513_v14, %v1435_v35  ;;  %v1567_v5 = vrot.slane %v1513_v14, %v1469_v53 }
 0x100   : > { %v1421_v21 = vadd.f32 %v1131_v11, %v570_v20  ;;  %v1168_v22 = vpop.f32.mrb[1].mxu1  ;;  %v1519_v20 = vrot.slane %v1440_v36, %v1503_v9 }
 0x101   : > { %1223 = vpow2.f32 %v1135_v16  ;;  %v1136_v19 = vmul.f32 -1.442695, %v497_v17  ;;  %v573_v24 = vpop.f32.mrb[2].mxu1  ;;  %v702_v16 = vrot.slane %v617_v7, %v1432_v34  ;;  %v1522_v22 = vsub.s32 6, %v1426_v30 }
 0x102   : > { %v1138_v25 = vmul.f32 -1.442695, %v1421_v21  ;;  %v1424_v26 = vadd.f32 %v1131_v11, %v573_v24  ;;  %v1169_v27 = vpop.f32.mrb[3].mxu1  ;;  %v656_v11 = vadd.f32 %v654_v3, %v646_v2  ;;  %v1529_v24 = vrot.slane %v617_v7, %v1506_v10 }
 0x103   : > { %1225 = vpow2.f32 %v1136_v19  ;;  %v674_v27 = vmul.f32 %v1519_v20, %v668_v15  ;;  %v1539_v47 = vrot.slane %v1440_v36, %v1522_v22  ;;  %v593_v36 = vadd.s32 %v591_v6, %v1445_v38 }
 0x104   : > { %1227 = vpow2.f32 %v1138_v25  ;;  %v1139_v32 = vmul.f32 -1.442695, %v1424_v26  ;;  %v666_v25 = vadd.f32 %v664_v12, %v656_v11  ;;  %v694_v12 = vmul.f32 %v1526_v23, %v688_v57 }
 0x105   : > { %vm595_vm5 = vcmp.lt.s32.totalorder %v593_v36, %v1457_v45 }
 0x10b   : > { %v1224_v28 = vpop.eup %1223 }
 0x10c   : > { %v506_v29 = vadd.f32 1.0, %v1224_v28  ;;  %v1534_v28 = vrot.slane %v1513_v14, %v1432_v34 }
 0x10d   : > { %v1226_v31 = vpop.eup %1225 }
 0x10e   : > { %1229 = vrcp.f32 %v506_v29  ;;  %v507_v33 = vadd.f32 1.0, %v1226_v31  ;;  %v1228_v49 = vpop.eup %1227 }
 0x10f   : > { %v583_v58 = vadd.f32 1.0, %v1228_v49  ;;  %v727_v49 = vrot.slane %v617_v7, %v1469_v53 }
 0x110   : > { %1231 = vrcp.f32 %v507_v33 }
 0x111   : > { %1233 = vpow2.f32 %v1139_v32 }
 0x112   : > { %1235 = vrcp.f32 %v583_v58 }
 0x118   : > { %v1230_v51 = vpop.eup %1229 }
 0x119   : > { %v512_v54 = vmul.f32 %v1230_v51, %v494_v13  ;;  %v592_v13 = vadd.s32 %v591_v6, %v1426_v30  ;;  %v678_v30 = vld [vmem:[#allocation2 + $0x7] sm:$0xff]  ;;  %v1555_v51 = vrot.slane %v1513_v14, %v1455_v44  ;;  %v1571_v6 = vrot.slane %v1513_v14, %v1483_v0 }
 0x11a   : > { %v1232_v55 = vpop.eup %1231  ;;  %v684_v56 = vmul.f32 %v1539_v47, %v678_v30 }
 0x11b   : > { %v1234_v59 = vpop.eup %1233  ;;  %v527_v60 = vsel %vm521_vm2, %v512_v54, 0.0  ;;  %v513_v61 = vmul.f32 %v1232_v55, %v497_v17  ;;  %v709_v17 = vrot.slane %v617_v7, %v1435_v35  ;;  %vm594_vm4 = vcmp.lt.s32.totalorder %v592_v13, %v1457_v45 }
 0x11c   : > { %612 = vst.msk [vmem:[#allocation2 + $0x10] sm:$0xff] %vm455_vm1, %v527_v60  ;;  %v584_v4 = vadd.f32 1.0, %v1234_v59  ;;  %v1236_v42 = vpop.eup %1235  ;;  %v676_v55 = vadd.f32 %v674_v27, %v666_v25 }
 0x11d   : > { %v528_v1 = vsel %vm522_vm3, %v513_v61, 0.0  ;;  %v589_v2 = vmul.f32 %v1236_v42, %v1421_v21  ;;  %v1595_v42 = vrot.slane %v1513_v14, %v1506_v10 }
 0x11e   : > { %613 = vst.msk [vmem:[#allocation2 + $0x18] sm:$0xff] %vm455_vm1, %v528_v1  ;;  %1237 = vrcp.f32 %v584_v4  ;;  %v1562_v4 = vrot.slane %v617_v7, %v1522_v22 }
 0x123   : > { %v621_v18 = vld [vmem:[#allocation2 + $0x9] sm:$0xff] }
 0x124   : > { %v629_v19 = vld [vmem:[#allocation2 + $0xa] sm:$0xff]  ;;  %v627_v29 = vmul.f32 %v625_v39, %v621_v18  ;;  %v703_v33 = vmul.f32 %v702_v16, %v621_v18  ;;  %v1548_v39 = vrot.slane %v617_v7, %v1483_v0 }
 0x125   : > { %v635_v31 = vmul.f32 %v633_v40, %v629_v19  ;;  %v698_v32 = vld [vmem:[#allocation2 + $0x11] sm:$0xff]  ;;  %v710_v41 = vmul.f32 %v709_v17, %v629_v19  ;;  %v1551_v40 = vrot.slane %v617_v7, %v1503_v9  ;;  %v686_v7 = vadd.f32 %v684_v56, %v676_v55 }
 0x126   : > { %v705_v37 = vld [vmem:[#allocation2 + $0x12] sm:$0xff]  ;;  %v704_v58 = vmul.f32 %v702_v16, %v698_v32  ;;  %v773_v1 = vmul.f32 %v1534_v28, %v698_v32 }
 0x127   : > { %v639_v54 = vld [vmem:[#allocation2 + $0xb] sm:$0xff]  ;;  %v711_v59 = vmul.f32 %v709_v17, %v705_v37  ;;  %v637_v60 = vadd.f32 %v635_v31, %v627_v29  ;;  %v712_v61 = vadd.f32 %v710_v41, %v703_v33  ;;  %v714_v62 = vld [vmem:[#allocation2 + $0x13] sm:$0xff]  ;;  %v780_v38 = vmul.f32 %v1545_v50, %v705_v37 }
 0x128   : > { %v1238_v3 = vpop.eup %1237  ;;  %v645_v11 = vmul.f32 %v1466_v52, %v639_v54  ;;  %v719_v15 = vmul.f32 %v718_v48, %v639_v54  ;;  %v649_v21 = vld [vmem:[#allocation2 + $0xc] sm:$0xff]  ;;  %v789_v18 = vmul.f32 %v1555_v51, %v714_v62  ;;  %v723_v27 = vld [vmem:[#allocation2 + $0x14] sm:$0xff]  ;;  %v600_v29 = vsel %vm594_vm4, %v589_v2, 0.0 }
 0x129   : > { %v713_v16 = vadd.f32 %v711_v59, %v704_v58  ;;  %v782_v17 = vadd.f32 %v780_v38, %v773_v1  ;;  %v619_v52 = vld [vmem:[%s1706_s5 + $0x18] sm:$0x7f]  ;;  %v590_v31 = vmul.f32 %v1238_v3, %v1424_v26  ;;  %v720_v30 = vmul.f32 %v718_v48, %v714_v62  ;;  %614 = vst.msk [vmem:[#allocation2 + $0x20] sm:$0xff] %vm455_vm1, %v600_v29  ;;  %v659_v48 = vld [vmem:[#allocation2 + $0xd] sm:$0xff] }
 0x12a   : > { %v647_v19 = vadd.f32 %v645_v11, %v637_v60  ;;  %v721_v25 = vadd.f32 %v719_v15, %v712_v61  ;;  %v1585_v33 = vrot.slane %v1513_v14, %v1503_v9  ;;  %v1589_v37 = vrot.slane %v1513_v14, %v1522_v22  ;;  %v1603_v58 = vld [vmem:[#allocation2 + $0x10] sm:$0xff] }
 0x12b   : > { %v791_v32 = vadd.f32 %v789_v18, %v782_v17  ;;  %v655_v13 = vmul.f32 %v1480_v63, %v649_v21  ;;  %v728_v41 = vmul.f32 %v727_v49, %v649_v21  ;;  %v601_v26 = vsel %vm595_vm5, %v590_v31, 0.0  ;;  %v669_v59 = vld [vmem:[#allocation2 + $0xe] sm:$0xff] }
 0x12c   : > { %v722_v54 = vadd.f32 %v720_v30, %v713_v16  ;;  %v798_v55 = vmul.f32 %v1567_v5, %v723_v27  ;;  %v842_v56 = vrot.slane %v619_v52, %v1432_v34  ;;  %v849_v57 = vrot.slane %v619_v52, %v1435_v35  ;;  %615 = vst.msk [vmem:[#allocation2 + $0x28] sm:$0xff] %vm455_vm1, %v601_v26  ;;  %v732_v14 = vld [vmem:[#allocation2 + $0x15] sm:$0xff] }
 0x12d   : > { %v657_v63 = vadd.f32 %v655_v13, %v647_v19  ;;  %v1605_v60 = vadd.f32 %v694_v12, %v686_v7  ;;  %v730_v10 = vadd.f32 %v728_v41, %v721_v25  ;;  %v1608_v36 = vrot.slane %v619_v52, %v1455_v44  ;;  %v679_v61 = vld [vmem:[#allocation2 + $0xf] sm:$0xff]  ;;  %v759_v19 = vld [vmem:[#allocation2 + $0x18] sm:$0xff] }
 0x12e   : > { %v729_v62 = vmul.f32 %v727_v49, %v723_v27  ;;  %v800_v1 = vadd.f32 %v798_v55, %v791_v32  ;;  %v1611_v34 = vrot.slane %v619_v52, %v1469_v53  ;;  %v1614_v35 = vrot.slane %v619_v52, %v1483_v0  ;;  %v741_v12 = vld [vmem:[#allocation2 + $0x16] sm:$0xff] }
 0x12f   : > { %v665_v2 = vmul.f32 %v1500_v8, %v659_v48  ;;  %v737_v3 = vmul.f32 %v1548_v39, %v659_v48  ;;  %v1619_v38 = vrot.slane %v619_v52, %v1503_v9  ;;  %v1622_v11 = vrot.slane %v619_v52, %v1522_v22  ;;  %v750_v0 = vld [vmem:[#allocation2 + $0x17] sm:$0xff] }
 0x130   : > { %v1626_v44 = vmul.f32 %v1529_v24, %v1603_v58  ;;  %v675_v53 = vmul.f32 %v1519_v20, %v669_v59  ;;  %v731_v49 = vadd.f32 %v729_v62, %v722_v54  ;;  %v807_v15 = vmul.f32 %v1571_v6, %v732_v14  ;;  %v768_v16 = vld [vmem:[#allocation2 + $0x19] sm:$0xff] }
 0x131   : > { %v667_v8 = vadd.f32 %v665_v2, %v657_v63  ;;  %v685_v21 = vmul.f32 %v1539_v47, %v679_v61  ;;  %v738_v9 = vmul.f32 %v1548_v39, %v732_v14  ;;  %v739_v7 = vadd.f32 %v737_v3, %v730_v10  ;;  %v775_v22 = vld [vmem:[#allocation2 + $0x1a] sm:$0xff] }
 0x132   : > { %v784_v17 = vld [vmem:[#allocation2 + $0x1b] sm:$0xff]  ;;  %v746_v18 = vmul.f32 %v1551_v40, %v669_v59  ;;  %v809_v25 = vadd.f32 %v807_v15, %v800_v1  ;;  %v774_v20 = vmul.f32 %v1534_v28, %v768_v16  ;;  %v781_v27 = vmul.f32 %v1545_v50, %v775_v22 }
 0x133   : > { %v747_v29 = vmul.f32 %v1551_v40, %v741_v12  ;;  %v755_v52 = vmul.f32 %v1562_v4, %v679_v61  ;;  %v756_v47 = vmul.f32 %v1562_v4, %v750_v0  ;;  %v793_v31 = vld [vmem:[#allocation2 + $0x1c] sm:$0xff]  ;;  %v843_v39 = vmul.f32 %v842_v56, %v768_v16 }
 0x134   : > { %v838_v30 = vld [vmem:[#allocation2 + $0x21] sm:$0xff]  ;;  %v740_v32 = vadd.f32 %v738_v9, %v731_v49  ;;  %v816_v13 = vmul.f32 %v1585_v33, %v741_v12  ;;  %v783_v41 = vadd.f32 %v781_v27, %v774_v20  ;;  %v790_v26 = vmul.f32 %v1555_v51, %v784_v17 }
 0x135   : > { %v845_v48 = vld [vmem:[#allocation2 + $0x22] sm:$0xff]  ;;  %v677_v54 = vadd.f32 %v675_v53, %v667_v8  ;;  %v748_v28 = vadd.f32 %v746_v18, %v739_v7  ;;  %v765_v50 = vmul.f32 %v1529_v24, %v759_v19  ;;  %v850_v40 = vmul.f32 %v849_v57, %v775_v22 }
 0x136   : > { %v802_v55 = vld [vmem:[#allocation2 + $0x1d] sm:$0xff]  ;;  %v818_v63 = vadd.f32 %v816_v13, %v809_v25  ;;  %v792_v59 = vadd.f32 %v790_v26, %v783_v41  ;;  %v799_v4 = vmul.f32 %v1567_v5, %v793_v31  ;;  %v844_v10 = vmul.f32 %v842_v56, %v838_v30 }
 0x137   : > { %v854_v14 = vld [vmem:[#allocation2 + $0x23] sm:$0xff]  ;;  %v825_v61 = vmul.f32 %v1589_v37, %v750_v0  ;;  %v852_v1 = vadd.f32 %v850_v40, %v843_v39  ;;  %v859_v2 = vmul.f32 %v1608_v36, %v784_v17  ;;  %v851_v51 = vmul.f32 %v849_v57, %v845_v48 }
 0x138   : > { %v811_v62 = vld [vmem:[#allocation2 + $0x1e] sm:$0xff]  ;;  %v749_v3 = vadd.f32 %v747_v29, %v740_v32  ;;  %v834_v53 = vmul.f32 %v1595_v42, %v759_v19  ;;  %v801_v49 = vadd.f32 %v799_v4, %v792_v59  ;;  %v808_v24 = vmul.f32 %v1571_v6, %v802_v55  ;;  %v881_v39 = vld [vmem:[#allocation2 + $0x26] sm:$0xff] }
 0x139   : > { %v863_v12 = vld [vmem:[#allocation2 + $0x24] sm:$0xff]  ;;  %v861_v8 = vadd.f32 %v859_v2, %v852_v1  ;;  %v868_v5 = vmul.f32 %v1611_v34, %v793_v31  ;;  %v853_v56 = vadd.f32 %v851_v51, %v844_v10  ;;  %v860_v9 = vmul.f32 %v1608_v36, %v854_v14  ;;  %v1140_v10 = vld [vmem:[%s1707_s6] ss:$0 sm:$0xff] }
 0x13a   : > { %v820_v15 = vld [vmem:[#allocation2 + $0x1f] sm:$0xff]  ;;  %v757_v0 = vadd.f32 %v755_v52, %v748_v28  ;;  %v827_v7 = vadd.f32 %v825_v61, %v818_v63  ;;  %v810_v16 = vadd.f32 %v808_v24, %v801_v49  ;;  %v817_v22 = vmul.f32 %v1585_v33, %v811_v62  ;;  %v890_v48 = vld [vmem:[#allocation2 + $0x27] sm:$0xff] }
 0x13b   : > { %v872_v57 = vld [vmem:[#allocation2 + $0x25] sm:$0xff]  ;;  %v870_v18 = vadd.f32 %v868_v5, %v861_v8  ;;  %v877_v19 = vmul.f32 %v1614_v35, %v802_v55  ;;  %v862_v25 = vadd.f32 %v860_v9, %v853_v56  ;;  %v869_v6 = vmul.f32 %v1611_v34, %v863_v12 }
 0x13c   : > { %v829_v17 = vld [vmem:[#allocation2 + $0x20] sm:$0xff]  ;;  %v687_v20 = vadd.f32 %v685_v21, %v677_v54  ;;  %v758_v27 = vadd.f32 %v756_v47, %v749_v3  ;;  %v819_v29 = vadd.f32 %v817_v22, %v810_v16  ;;  %v826_v31 = vmul.f32 %v1589_v37, %v820_v15 }
 0x13d   : > { %v879_v36 = vadd.f32 %v877_v19, %v870_v18  ;;  %v886_v52 = vmul.f32 %v1619_v38, %v811_v62  ;;  %v871_v30 = vadd.f32 %v869_v6, %v862_v25  ;;  %v878_v33 = vmul.f32 %v1614_v35, %v872_v57 }
 0x13e   : > { %v766_v32 = vadd.f32 %v1626_v44, %v757_v0  ;;  %v836_v13 = vadd.f32 %v834_v53, %v827_v7  ;;  %v828_v41 = vadd.f32 %v826_v31, %v819_v29  ;;  %v835_v26 = vmul.f32 %v1595_v42, %v829_v17 }
 0x13f   : > { %v888_v34 = vadd.f32 %v886_v52, %v879_v36  ;;  %v895_v21 = vmul.f32 %v1622_v11, %v820_v15  ;;  %v880_v47 = vadd.f32 %v878_v33, %v871_v30  ;;  %v887_v37 = vmul.f32 %v1619_v38, %v881_v39 }
 0x140   : > { %v695_v54 = vmul.f32 %v1526_v23, %v1603_v58  ;;  %v767_v28 = vadd.f32 %v765_v50, %v758_v27  ;;  %v837_v55 = vadd.f32 %v835_v26, %v828_v41  ;;  %v896_v44 = vmul.f32 %v1622_v11, %v890_v48 }
 0x141   : > { %v897_v35 = vadd.f32 %v895_v21, %v888_v34  ;;  %v889_v40 = vadd.f32 %v887_v37, %v880_v47  ;;  %v899_v42 = vadd.f32 %v766_v32, %v1605_v60  ;;  %v1296_v2 = vmov (!%p1143_p1), 0.0  }
 0x142   : > { %v697_v63 = vadd.f32 %v695_v54, %v687_v20  ;;  %932 = vst.msk [vmem:[%s1397_s30] sm:$0x1] (!%p1143_p1), %vm931_vm7, %v1296_v2  ;;  %933 = vst.msk [vmem:[%s1402_s12] sm:$0x1] (!%p1143_p1), %vm931_vm7, %v1296_v2 }
 0x143   : > { %v901_v59 = vadd.f32 %v897_v35, %v836_v13  ;;  %v898_v4 = vadd.f32 %v896_v44, %v889_v40 }
 0x144   : > { %v900_v14 = vadd.f32 %v767_v28, %v697_v63 }
 0x145   : > { %v903_v38 = vadd.f32 %v901_v59, %v899_v42  ;;  %v902_v61 = vadd.f32 %v898_v4, %v837_v55 }
 0x147   : > { %v912_v23 = vadd.f32 %v1140_v10, %v903_v38  ;;  %v904_v58 = vadd.f32 %v902_v61, %v900_v14 }
 0x148   : > { %930 = sbr.rel (%p1143_p1) target bundleno = 335 (0x14f), region = 48 }
 0x149   : > { %v914_v60 = vsel %vm521_vm2, %v912_v23, 0.0  ;;  %v913_v11 = vadd.f32 %v1140_v10, %v904_v58 }
 0x14a   : > { %v1146_v50 = vpack.c.bf16 %v914_v60, %v914_v60 }
 0x14b   : > { %v915_v62 = vsel %vm522_vm3, %v913_v11, 0.0 }
 0x14c   : > { %925 = vst.msk [vmem:[%s418_s28] sm:$0xf] %vm924_vm6, %v1146_v50  ;;  %v1147_v1 = vpack.c.bf16 %v915_v62, %v915_v62 }
 0x14e   : > { %926 = vst.msk [vmem:[%s418_s28 + $0x4] sm:$0xf] %vm924_vm6, %v1147_v1 }
 0x14f PF: > { %v935_v43 = vsel %vm455_vm1, %v914_v60, 0.0  ;;  %v936_v51 = vsel %vm455_vm1, %v915_v62, 0.0  ;;  %v948_v45 = vmul.f32 %v914_v60, %v914_v60  ;;  %v949_v3 = vmul.f32 %v915_v62, %v915_v62  ;;  %v934_v16 = vld [vmem:[%s1397_s30] sm:$0x1] }
 0x150   : > { %v937_v46 = vadd.f32 %v936_v51, %v935_v43  ;;  %vm945_vm8 = vcmask 253952   ;;  %v947_v19 = vld [vmem:[%s1402_s12] sm:$0x1] }
 0x151   : > { %v950_v53 = vsel %vm455_vm1, %v948_v45, 0.0  ;;  %v951_v24 = vsel %vm455_vm1, %v949_v3, 0.0 }
 0x152   : > { %v938_v49 = vrot.slane %v937_v46, 4  ;;  %v952_v12 = vadd.f32 %v951_v24, %v950_v53 }
 0x154   : > { %v939_v15 = vadd.f32 %v938_v49, %v937_v46  ;;  %v953_v8 = vrot.slane %v952_v12, 4 }
 0x156   : > { %v940_v5 = vrot.slane %v939_v15, 2  ;;  %v954_v56 = vadd.f32 %v953_v8, %v952_v12 }
 0x158   : > { %v941_v9 = vadd.f32 %v940_v5, %v939_v15  ;;  %v955_v0 = vrot.slane %v954_v56, 2 }
 0x15a   : > { %v942_v7 = vrot.slane %v941_v9, 1  ;;  %v956_v22 = vadd.f32 %v955_v0, %v954_v56 }
 0x15c   : > { %v943_v57 = vadd.f32 %v942_v7, %v941_v9  ;;  %v957_v17 = vrot.slane %v956_v22, 1 }
 0x15e   : > { %v944_v18 = vadd.f32 %v943_v57, %v934_v16  ;;  %v958_v25 = vadd.f32 %v957_v17, %v956_v22 }
 0x160   : > { %946 = vst.msk [vmem:[%s1397_s30] sm:$0x1] %vm945_vm8, %v944_v18  ;;  %v959_v6 = vadd.f32 %v958_v25, %v947_v19 }
 0x162   : > { %960 = vst.msk [vmem:[%s1402_s12] sm:$0x1] %vm945_vm8, %v959_v6 }
 0x163 PF: > { %s26_s17 = sadd.s32 1, %s1291_s17   ;;  %s1711_s14 = smov %s1283_s16 }
 0x164   : > { %p23_p2 = scmp.ge.s32.totalorder %s26_s17, 8   ;;  %s1712_s15 = smov %s1287_s0 }
 0x165   : > { %s1713_s16 = smov %s1716_s18  ;;  %s1714_s0 = smov %s1720_s19 }
 0x166   :  { %25 = sbr.rel (!%p23_p2) target bundleno = 18 (0x12), region = 105 }

</bundles_post_ra>
